<compile_context>
chip_gen: v5e
topology: v5e:2x2
jax: 0.10.0
libtpu: 0.0.40
codegen_flags: <defaults>
</compile_context>

<pallas_src>
import functools

import numpy as np

import jax
import jax.numpy as jnp
from jax import lax
from jax.experimental import pallas as pl
from jax.experimental.pallas import tpu as pltpu

NUM_CLASSES = 10
_LANE = 128      # lane tile
_SUB_BF16 = 16   # sublane packing for bf16
_TILE_M_MAX = 512


# ----------------------------- small helpers --------------------------------

def _round_up(n, m):
    return -(-n // m) * m


def _pad2d_np(a, rows, cols):
    """Zero-pad the last two dims of a numpy array to (rows, cols)."""
    a = np.asarray(a, np.float32)
    out = np.zeros(a.shape[:-2] + (rows, cols), np.float32)
    out[..., : a.shape[-2], : a.shape[-1]] = a
    return out


# ----------------------------- fused Pallas kernel ---------------------------

def _fused_forward_kernel(x_ref, w1c_ref, b1_ref, w2c_ref, b2_ref,
                          wf1_ref, bf1_ref, wf2_ref, bf2_ref, o_ref,
                          *, n_classes, n_h1_p, n_h2_p):
    """Whole network for one M-tile; all MXU operands bf16, (8,128)-aligned."""
    x = x_ref[...]                                           # bf16 (TM, 256)

    # Conv2d(1, C, k) + MaxPool2d(2) + ReLU:
    # one wide matmul over all 4 pool corners, max over 128-aligned lane
    # slices, then (hoisted) bias + ReLU.
    t = jnp.dot(x, w1c_ref[...], preferred_element_type=jnp.float32)
    h = jnp.maximum(
        jnp.maximum(t[:, 0 * n_h1_p:1 * n_h1_p], t[:, 1 * n_h1_p:2 * n_h1_p]),
        jnp.maximum(t[:, 2 * n_h1_p:3 * n_h1_p], t[:, 3 * n_h1_p:4 * n_h1_p]))
    h = jnp.maximum(h + b1_ref[...], 0.0)                    # f32 (TM, 256)

    # Conv2d(C, 2C, k) + Dropout(eval: identity) + MaxPool2d(2) + ReLU.
    # TODO(synk): training-mode dropout masking (pltpu.prng_random_bits) not implemented.
    t2 = jnp.dot(h.astype(jnp.bfloat16), w2c_ref[...],
                 preferred_element_type=jnp.float32)
    g = jnp.maximum(
        jnp.maximum(t2[:, 0 * n_h2_p:1 * n_h2_p], t2[:, 1 * n_h2_p:2 * n_h2_p]),
        jnp.maximum(t2[:, 2 * n_h2_p:3 * n_h2_p], t2[:, 3 * n_h2_p:4 * n_h2_p]))
    g = jnp.maximum(g + b2_ref[...], 0.0)                    # f32 (TM, 128)

    # Linear(flat, 50) + ReLU
    g = jnp.dot(g.astype(jnp.bfloat16), wf1_ref[...],
                preferred_element_type=jnp.float32) + bf1_ref[...]
    g = jnp.maximum(g, 0.0)

    # Linear(50, 10) + log_softmax(dim=1) over the valid (first n_classes) lanes
    logits = jnp.dot(g.astype(jnp.bfloat16), wf2_ref[...],
                     preferred_element_type=jnp.float32) + bf2_ref[...]
    col = lax.broadcasted_iota(jnp.int32, logits.shape, 1)
    valid = col < n_classes
    masked = jnp.where(valid, logits, jnp.float32(-1e30))
    m = jnp.max(masked, axis=-1, keepdims=True)
    z = masked - m
    e = jnp.where(valid, jnp.exp(z), 0.0)
    lse = jnp.log(jnp.sum(e, axis=-1, keepdims=True))
    o_ref[...] = z - lse                # lane-dense (TM, 128) store; sliced outside


# ------------------------- parameters & weight folding -----------------------

def init_params(channel, kernel_size, in_c, H, W, key):
    """PyTorch-layout parameters (conv w: OIHW, fc weights stored as (in, out))."""
    c2 = channel * 2
    K = kernel_size
    # replicate the dummy-input shape inference from the PyTorch __init__
    H1, W1 = H - K + 1, W - K + 1
    P1h, P1w = H1 // 2, W1 // 2
    H2, W2 = P1h - K + 1, P1w - K + 1
    P2h, P2w = H2 // 2, W2 // 2
    flat = c2 * P2h * P2w

    ks = jax.random.split(key, 8)
    w1 = jax.random.normal(ks[0], (channel, in_c, K, K), jnp.float32) * 0.2
    b1 = jax.random.normal(ks[1], (channel,), jnp.float32) * 0.1
    w2 = jax.random.normal(ks[2], (c2, channel, K, K), jnp.float32) * 0.1
    b2 = jax.random.normal(ks[3], (c2,), jnp.float32) * 0.1
    wf1 = jax.random.normal(ks[4], (flat, 50), jnp.float32) * 0.1
    bf1 = jax.random.normal(ks[5], (50,), jnp.float32) * 0.1
    wf2 = jax.random.normal(ks[6], (50, 10), jnp.float32) * 0.1
    bf2 = jax.random.normal(ks[7], (10,), jnp.float32) * 0.1
    return (w1, b1, w2, b2, wf1, bf1, wf2, bf2)


def build_fused_params(params, *, in_c, H, W, K):
    """Fold conv+pool layers into per-pool-corner dense matrices, concatenate
    the 4 corners along lanes into ONE wide matrix per stage, pad everything
    to (8,128)-aligned shapes once, and cast MXU operands to bf16."""
    w1, b1, w2, b2, wf1, bf1, wf2, bf2 = [np.asarray(p) for p in params]
    C, C2 = w1.shape[0], w2.shape[0]
    assert w1.shape[1] == in_c

    H1, W1d = H - K + 1, W - K + 1          # conv1 output spatial
    P1h, P1w = H1 // 2, W1d // 2            # pool1 output spatial
    H2, W2d = P1h - K + 1, P1w - K + 1      # conv2 output spatial
    P2h, P2w = H2 // 2, W2d // 2            # pool2 output spatial

    n_in = in_c * H * W                     # 256
    n_h1 = C * P1h * P1w                    # 196
    n_h2 = C2 * P2h * P2w                   # 32 (== flatten dim)

    corners = ((0, 0), (0, 1), (1, 0), (1, 1))

    # conv1 folded with each max-pool corner: (4, n_in, n_h1)
    w1c = np.zeros((4, n_in, n_h1), np.float32)
    for ci, (dh, dw) in enumerate(corners):
        for c in range(C):
            for ph in range(P1h):
                for pw in range(P1w):
                    col = (c * P1h + ph) * P1w + pw
                    oh, ow = 2 * ph + dh, 2 * pw + dw
                    for ic in range(in_c):
                        for kh in range(K):
                            for kw in range(K):
                                row = (ic * H + oh + kh) * W + (ow + kw)
                                w1c[ci, row, col] += w1[c, ic, kh, kw]
    b1col = np.repeat(b1, P1h * P1w).reshape(1, -1)

    # conv2 folded with each max-pool corner: (4, n_h1, n_h2)
    w2c = np.zeros((4, n_h1, n_h2), np.float32)
    for ci, (dh, dw) in enumerate(corners):
        for c2 in range(C2):
            for qh in range(P2h):
                for qw in range(P2w):
                    col = (c2 * P2h + qh) * P2w + qw
                    oh, ow = 2 * qh + dh, 2 * qw + dw
                    for c in range(C):
                        for kh in range(K):
                            for kw in range(K):
                                row = (c * P1h + oh + kh) * P1w + (ow + kw)
                                w2c[ci, row, col] += w2[c2, c, kh, kw]
    b2col = np.repeat(b2, P2h * P2w).reshape(1, -1)

    n_in_p = _round_up(n_in, _LANE)
    n_h1_p = _round_up(n_h1, _LANE)
    n_h2_p = _round_up(n_h2, _LANE)
    n_f1_p = _round_up(wf1.shape[1], _LANE)
    n_cls_p = _round_up(wf2.shape[1], _LANE)

    # Pad each corner block to 128-aligned width, then concatenate the four
    # corners along lanes -> one wide MXU matmul per stage.
    w1cat = np.concatenate(list(_pad2d_np(w1c, n_in_p, n_h1_p)), axis=1)  # (256, 4*256)
    w2cat = np.concatenate(list(_pad2d_np(w2c, n_h1_p, n_h2_p)), axis=1)  # (256, 4*128)

    bf16 = jnp.bfloat16
    f32 = jnp.float32
    fused = (
        jnp.asarray(w1cat, bf16),                                   # (256, 1024) bf16
        jnp.asarray(_pad2d_np(b1col, 1, n_h1_p), f32),              # (1, 256)
        jnp.asarray(w2cat, bf16),                                   # (256, 512)  bf16
        jnp.asarray(_pad2d_np(b2col, 1, n_h2_p), f32),              # (1, 128)
        jnp.asarray(_pad2d_np(wf1, n_h2_p, n_f1_p), bf16),          # (128, 128)  bf16
        jnp.asarray(_pad2d_np(bf1.reshape(1, -1), 1, n_f1_p), f32), # (1, 128)
        jnp.asarray(_pad2d_np(wf2, n_f1_p, n_cls_p), bf16),         # (128, 128)  bf16
        jnp.asarray(_pad2d_np(bf2.reshape(1, -1), 1, n_cls_p), f32),# (1, 128)
    )
    return fused


# ------------------------------- the network --------------------------------

def my_network_forward(x, fused_params):
    """x: (N, in_c, H, W) -> (N, 10) log-probabilities.  One gridded pallas_call."""
    w1c, b1, w2c, b2, wf1, bf1, wf2, bf2 = fused_params
    n = x.shape[0]
    n_in_p = w1c.shape[0]
    n_h1_p = b1.shape[1]
    n_h2_p = b2.shape[1]
    out_cols = wf2.shape[1]                              # 128, lane-dense output

    x2d = x.reshape(n, -1).astype(jnp.bfloat16)          # NCHW flatten, bf16 DMA
    mp = _round_up(n, _SUB_BF16)                         # pad only to sublane multiple
    x2d = jnp.pad(x2d, ((0, mp - n), (0, n_in_p - x2d.shape[1])))

    tile_m = min(_TILE_M_MAX, mp)                        # fits every generation's VMEM
    grid = (pl.cdiv(mp, tile_m),)

    kernel = functools.partial(_fused_forward_kernel, n_classes=NUM_CLASSES,
                               n_h1_p=n_h1_p, n_h2_p=n_h2_p)
    out = pl.pallas_call(
        kernel,
        out_shape=jax.ShapeDtypeStruct((mp, out_cols), jnp.float32),
        grid=grid,
        in_specs=[
            pl.BlockSpec((tile_m, n_in_p), lambda i: (i, 0)),   # batch-tiled input
            pl.BlockSpec(w1c.shape, lambda i: (0, 0)),          # weights: VMEM-resident
            pl.BlockSpec(b1.shape, lambda i: (0, 0)),
            pl.BlockSpec(w2c.shape, lambda i: (0, 0)),
            pl.BlockSpec(b2.shape, lambda i: (0, 0)),
            pl.BlockSpec(wf1.shape, lambda i: (0, 0)),
            pl.BlockSpec(bf1.shape, lambda i: (0, 0)),
            pl.BlockSpec(wf2.shape, lambda i: (0, 0)),
            pl.BlockSpec(bf2.shape, lambda i: (0, 0)),
        ],
        out_specs=pl.BlockSpec((tile_m, out_cols), lambda i: (i, 0)),
        compiler_params=pltpu.CompilerParams(
            dimension_semantics=("parallel",)),          # shards M steps across TCs (v7x)
    )(x2d, w1c, b1, w2c, b2, wf1, bf1, wf2, bf2)
    return out[:n, :NUM_CLASSES]


# --------------------------- pure-JAX reference ------------------------------

def reference_forward(x, params):
    """Direct translation of the PyTorch module in plain JAX (for validation)."""
    w1, b1, w2, b2, wf1, bf1, wf2, bf2 = params
    hp = jax.lax.Precision.HIGHEST
    dn = ('NCHW', 'OIHW', 'NCHW')
    y = lax.conv_general_dilated(x, w1, (1, 1), 'VALID',
                                 dimension_numbers=dn, precision=hp)
    y = y + b1[None, :, None, None]
    y = lax.reduce_window(y, -jnp.inf, lax.max, (1, 1, 2, 2), (1, 1, 2, 2), 'VALID')
    y = jnp.maximum(y, 0.0)
    y = lax.conv_general_dilated(y, w2, (1, 1), 'VALID',
                                 dimension_numbers=dn, precision=hp)
    y = y + b2[None, :, None, None]
    y = lax.reduce_window(y, -jnp.inf, lax.max, (1, 1, 2, 2), (1, 1, 2, 2), 'VALID')
    y = jnp.maximum(y, 0.0)
    y = y.reshape(y.shape[0], -1)
    y = jnp.maximum(jnp.dot(y, wf1, precision=hp) + bf1, 0.0)
    logits = jnp.dot(y, wf2, precision=hp) + bf2
    return jax.nn.log_softmax(logits, axis=1)


# ---------------------------------- main -------------------------------------

if __name__ == "__main__":
    channel, kernel_size = 4, 3
    in_c, H, W = 1, 16, 16
    batch = 2

    key = jax.random.PRNGKey(0)
    kx, kp = jax.random.split(key)
    x = jax.random.normal(kx, (batch, in_c, H, W), dtype=jnp.float32)
    params = init_params(channel, kernel_size, in_c, H, W, kp)

    # One-time weight folding / padding / bf16 cast (outside the jitted forward).
    fused = build_fused_params(params, in_c=in_c, H=H, W=W, K=kernel_size)

    fwd = jax.jit(my_network_forward)
    out = jax.block_until_ready(fwd(x, fused))

    assert out.shape == (batch, NUM_CLASSES), out.shape
    # log-softmax rows must exponentiate-sum to 1
    row_sums = jnp.exp(out).sum(axis=1)
    assert bool(jnp.allclose(row_sums, 1.0, atol=1e-3)), row_sums
    # match the plain-JAX f32 reference of the PyTorch forward pass
    # (tolerance accounts for bf16 MXU operands in the Pallas path)
    ref = reference_forward(x, params)
    assert bool(jnp.allclose(out, ref, atol=5e-2, rtol=5e-2)), (out, ref)

    print("KERNEL_OK")
</pallas_src>

<mosaic_0001>
module attributes {stable_mosaic.version = 11 : i64} {
  func.func @_fused_forward_kernel(%arg0: i32, %arg1: memref<16x256xbf16, #tpu.memory_space<vmem>>, %arg2: memref<256x1024xbf16, #tpu.memory_space<vmem>>, %arg3: memref<1x256xf32, #tpu.memory_space<vmem>>, %arg4: memref<256x512xbf16, #tpu.memory_space<vmem>>, %arg5: memref<1x128xf32, #tpu.memory_space<vmem>>, %arg6: memref<128x128xbf16, #tpu.memory_space<vmem>>, %arg7: memref<1x128xf32, #tpu.memory_space<vmem>>, %arg8: memref<128x128xbf16, #tpu.memory_space<vmem>>, %arg9: memref<1x128xf32, #tpu.memory_space<vmem>>, %arg10: memref<16x128xf32, #tpu.memory_space<vmem>>) attributes {dimension_semantics = [#tpu.dimension_semantics<parallel>], iteration_bounds = array<i64: 1>, scalar_prefetch = 0 : i64, scratch_operands = 0 : i64, tpu.core_type = #tpu.core_type<tc>, window_params = [{transform_indices = @transform_0, window_bounds = array<i64: 16, 256>}, {pipeline_mode = #tpu.pipeline_mode<synchronous>, transform_indices = @transform_1, window_bounds = array<i64: 256, 1024>}, {pipeline_mode = #tpu.pipeline_mode<synchronous>, transform_indices = @transform_2, window_bounds = array<i64: 1, 256>}, {pipeline_mode = #tpu.pipeline_mode<synchronous>, transform_indices = @transform_3, window_bounds = array<i64: 256, 512>}, {pipeline_mode = #tpu.pipeline_mode<synchronous>, transform_indices = @transform_4, window_bounds = array<i64: 1, 128>}, {pipeline_mode = #tpu.pipeline_mode<synchronous>, transform_indices = @transform_5, window_bounds = array<i64: 128, 128>}, {pipeline_mode = #tpu.pipeline_mode<synchronous>, transform_indices = @transform_6, window_bounds = array<i64: 1, 128>}, {pipeline_mode = #tpu.pipeline_mode<synchronous>, transform_indices = @transform_7, window_bounds = array<i64: 128, 128>}, {pipeline_mode = #tpu.pipeline_mode<synchronous>, transform_indices = @transform_8, window_bounds = array<i64: 1, 128>}, {transform_indices = @transform_9, window_bounds = array<i64: 16, 128>}]} {
    %c0 = arith.constant 0 : index
    %c0_0 = arith.constant 0 : index
    %0 = vector.load %arg1[%c0, %c0_0] : memref<16x256xbf16, #tpu.memory_space<vmem>>, vector<16x256xbf16>
    %c0_1 = arith.constant 0 : index
    %c0_2 = arith.constant 0 : index
    %1 = vector.load %arg2[%c0_1, %c0_2] : memref<256x1024xbf16, #tpu.memory_space<vmem>>, vector<256x1024xbf16>
    %cst = arith.constant dense<0.000000e+00> : vector<16x1024xf32>
    %2 = tpu.matmul %0, %1, %cst {dimension_numbers = #tpu.dot_dimension_numbers<[1], [0], [0], [1], [0, 0, 1, 1], [], []>} : vector<16x256xbf16>, vector<256x1024xbf16>, vector<16x1024xf32> -> vector<16x1024xf32>
    %3 = vector.extract_strided_slice %2 {offsets = [0, 0], sizes = [16, 256], strides = [1, 1]} : vector<16x1024xf32> to vector<16x256xf32>
    %4 = vector.extract_strided_slice %2 {offsets = [0, 256], sizes = [16, 256], strides = [1, 1]} : vector<16x1024xf32> to vector<16x256xf32>
    %5 = arith.maximumf %3, %4 : vector<16x256xf32>
    %6 = vector.extract_strided_slice %2 {offsets = [0, 512], sizes = [16, 256], strides = [1, 1]} : vector<16x1024xf32> to vector<16x256xf32>
    %7 = vector.extract_strided_slice %2 {offsets = [0, 768], sizes = [16, 256], strides = [1, 1]} : vector<16x1024xf32> to vector<16x256xf32>
    %8 = arith.maximumf %6, %7 : vector<16x256xf32>
    %9 = arith.maximumf %5, %8 : vector<16x256xf32>
    %c0_3 = arith.constant 0 : index
    %c0_4 = arith.constant 0 : index
    %10 = vector.load %arg3[%c0_3, %c0_4] : memref<1x256xf32, #tpu.memory_space<vmem>>, vector<1x256xf32>
    %11 = vector.broadcast %10 : vector<1x256xf32> to vector<16x256xf32>
    %12 = arith.addf %9, %11 : vector<16x256xf32>
    %cst_5 = arith.constant 0.000000e+00 : f32
    %13 = vector.broadcast %cst_5 : f32 to vector<16x256xf32>
    %14 = arith.maximumf %12, %13 : vector<16x256xf32>
    %15 = arith.truncf %14 : vector<16x256xf32> to vector<16x256xbf16>
    %c0_6 = arith.constant 0 : index
    %c0_7 = arith.constant 0 : index
    %16 = vector.load %arg4[%c0_6, %c0_7] : memref<256x512xbf16, #tpu.memory_space<vmem>>, vector<256x512xbf16>
    %cst_8 = arith.constant dense<0.000000e+00> : vector<16x512xf32>
    %17 = tpu.matmul %15, %16, %cst_8 {dimension_numbers = #tpu.dot_dimension_numbers<[1], [0], [0], [1], [0, 0, 1, 1], [], []>} : vector<16x256xbf16>, vector<256x512xbf16>, vector<16x512xf32> -> vector<16x512xf32>
    %18 = vector.extract_strided_slice %17 {offsets = [0, 0], sizes = [16, 128], strides = [1, 1]} : vector<16x512xf32> to vector<16x128xf32>
    %19 = vector.extract_strided_slice %17 {offsets = [0, 128], sizes = [16, 128], strides = [1, 1]} : vector<16x512xf32> to vector<16x128xf32>
    %20 = arith.maximumf %18, %19 : vector<16x128xf32>
    %21 = vector.extract_strided_slice %17 {offsets = [0, 256], sizes = [16, 128], strides = [1, 1]} : vector<16x512xf32> to vector<16x128xf32>
    %22 = vector.extract_strided_slice %17 {offsets = [0, 384], sizes = [16, 128], strides = [1, 1]} : vector<16x512xf32> to vector<16x128xf32>
    %23 = arith.maximumf %21, %22 : vector<16x128xf32>
    %24 = arith.maximumf %20, %23 : vector<16x128xf32>
    %c0_9 = arith.constant 0 : index
    %c0_10 = arith.constant 0 : index
    %25 = vector.load %arg5[%c0_9, %c0_10] : memref<1x128xf32, #tpu.memory_space<vmem>>, vector<1x128xf32>
    %26 = vector.broadcast %25 : vector<1x128xf32> to vector<16x128xf32>
    %27 = arith.addf %24, %26 : vector<16x128xf32>
    %cst_11 = arith.constant 0.000000e+00 : f32
    %28 = vector.broadcast %cst_11 : f32 to vector<16x128xf32>
    %29 = arith.maximumf %27, %28 : vector<16x128xf32>
    %30 = arith.truncf %29 : vector<16x128xf32> to vector<16x128xbf16>
    %c0_12 = arith.constant 0 : index
    %c0_13 = arith.constant 0 : index
    %31 = vector.load %arg6[%c0_12, %c0_13] : memref<128x128xbf16, #tpu.memory_space<vmem>>, vector<128x128xbf16>
    %cst_14 = arith.constant dense<0.000000e+00> : vector<16x128xf32>
    %32 = tpu.matmul %30, %31, %cst_14 {dimension_numbers = #tpu.dot_dimension_numbers<[1], [0], [0], [1], [0, 0, 1, 1], [], []>} : vector<16x128xbf16>, vector<128x128xbf16>, vector<16x128xf32> -> vector<16x128xf32>
    %c0_15 = arith.constant 0 : index
    %c0_16 = arith.constant 0 : index
    %33 = vector.load %arg7[%c0_15, %c0_16] : memref<1x128xf32, #tpu.memory_space<vmem>>, vector<1x128xf32>
    %34 = vector.broadcast %33 : vector<1x128xf32> to vector<16x128xf32>
    %35 = arith.addf %32, %34 : vector<16x128xf32>
    %cst_17 = arith.constant 0.000000e+00 : f32
    %36 = vector.broadcast %cst_17 : f32 to vector<16x128xf32>
    %37 = arith.maximumf %35, %36 : vector<16x128xf32>
    %38 = arith.truncf %37 : vector<16x128xf32> to vector<16x128xbf16>
    %c0_18 = arith.constant 0 : index
    %c0_19 = arith.constant 0 : index
    %39 = vector.load %arg8[%c0_18, %c0_19] : memref<128x128xbf16, #tpu.memory_space<vmem>>, vector<128x128xbf16>
    %cst_20 = arith.constant dense<0.000000e+00> : vector<16x128xf32>
    %40 = tpu.matmul %38, %39, %cst_20 {dimension_numbers = #tpu.dot_dimension_numbers<[1], [0], [0], [1], [0, 0, 1, 1], [], []>} : vector<16x128xbf16>, vector<128x128xbf16>, vector<16x128xf32> -> vector<16x128xf32>
    %c0_21 = arith.constant 0 : index
    %c0_22 = arith.constant 0 : index
    %41 = vector.load %arg9[%c0_21, %c0_22] : memref<1x128xf32, #tpu.memory_space<vmem>>, vector<1x128xf32>
    %42 = vector.broadcast %41 : vector<1x128xf32> to vector<16x128xf32>
    %43 = arith.addf %40, %42 : vector<16x128xf32>
    %44 = tpu.iota {dimensions = array<i32: 1>} : vector<16x128xi32>
    %c10_i32 = arith.constant 10 : i32
    %45 = vector.broadcast %c10_i32 : i32 to vector<16x128xi32>
    %46 = arith.cmpi slt, %44, %45 : vector<16x128xi32>
    %cst_23 = arith.constant -1.000000e+30 : f32
    %47 = vector.broadcast %cst_23 : f32 to vector<16x128xf32>
    %48 = arith.select %46, %43, %47 : vector<16x128xi1>, vector<16x128xf32>
    %cst_24 = arith.constant dense<0xFF800000> : vector<16xf32>
    %49 = vector.multi_reduction <maximumf>, %48, %cst_24 [1] : vector<16x128xf32> to vector<16xf32>
    %50 = vector.shape_cast %49 : vector<16xf32> to vector<16x1xf32>
    %51 = vector.broadcast %50 : vector<16x1xf32> to vector<16x128xf32>
    %52 = arith.subf %48, %51 : vector<16x128xf32>
    %53 = math.exp %52 : vector<16x128xf32>
    %cst_25 = arith.constant 0.000000e+00 : f32
    %54 = vector.broadcast %cst_25 : f32 to vector<16x128xf32>
    %55 = arith.select %46, %53, %54 : vector<16x128xi1>, vector<16x128xf32>
    %cst_26 = arith.constant dense<0.000000e+00> : vector<16xf32>
    %56 = vector.multi_reduction <add>, %55, %cst_26 [1] : vector<16x128xf32> to vector<16xf32>
    %57 = vector.shape_cast %56 : vector<16xf32> to vector<16x1xf32>
    %58 = math.log %57 : vector<16x1xf32>
    %59 = vector.broadcast %58 : vector<16x1xf32> to vector<16x128xf32>
    %60 = arith.subf %52, %59 : vector<16x128xf32>
    %c0_27 = arith.constant 0 : index
    %c0_28 = arith.constant 0 : index
    %61 = vector.load %arg10[%c0_27, %c0_28] : memref<16x128xf32, #tpu.memory_space<vmem>>, vector<16x128xf32>
    tpu.vector_store %arg10[%c0_27, %c0_28], %60 {strides = array<i32>} : memref<16x128xf32, #tpu.memory_space<vmem>>, vector<16x128xf32>,
    return
  }
  func.func @transform_0(%arg0: i32) -> (i32, i32) {
    %c0_i32 = arith.constant 0 : i32
    %c0_i32_0 = arith.constant 0 : i32
    return %arg0, %c0_i32 : i32, i32
  }
  func.func @transform_1(%arg0: i32) -> (i32, i32) {
    %c0_i32 = arith.constant 0 : i32
    %c0_i32_0 = arith.constant 0 : i32
    %c0_i32_1 = arith.constant 0 : i32
    return %c0_i32, %c0_i32_0 : i32, i32
  }
  func.func @transform_2(%arg0: i32) -> (i32, i32) {
    %c0_i32 = arith.constant 0 : i32
    %c0_i32_0 = arith.constant 0 : i32
    %c0_i32_1 = arith.constant 0 : i32
    return %c0_i32, %c0_i32_0 : i32, i32
  }
  func.func @transform_3(%arg0: i32) -> (i32, i32) {
    %c0_i32 = arith.constant 0 : i32
    %c0_i32_0 = arith.constant 0 : i32
    %c0_i32_1 = arith.constant 0 : i32
    return %c0_i32, %c0_i32_0 : i32, i32
  }
  func.func @transform_4(%arg0: i32) -> (i32, i32) {
    %c0_i32 = arith.constant 0 : i32
    %c0_i32_0 = arith.constant 0 : i32
    %c0_i32_1 = arith.constant 0 : i32
    return %c0_i32, %c0_i32_0 : i32, i32
  }
  func.func @transform_5(%arg0: i32) -> (i32, i32) {
    %c0_i32 = arith.constant 0 : i32
    %c0_i32_0 = arith.constant 0 : i32
    %c0_i32_1 = arith.constant 0 : i32
    return %c0_i32, %c0_i32_0 : i32, i32
  }
  func.func @transform_6(%arg0: i32) -> (i32, i32) {
    %c0_i32 = arith.constant 0 : i32
    %c0_i32_0 = arith.constant 0 : i32
    %c0_i32_1 = arith.constant 0 : i32
    return %c0_i32, %c0_i32_0 : i32, i32
  }
  func.func @transform_7(%arg0: i32) -> (i32, i32) {
    %c0_i32 = arith.constant 0 : i32
    %c0_i32_0 = arith.constant 0 : i32
    %c0_i32_1 = arith.constant 0 : i32
    return %c0_i32, %c0_i32_0 : i32, i32
  }
  func.func @transform_8(%arg0: i32) -> (i32, i32) {
    %c0_i32 = arith.constant 0 : i32
    %c0_i32_0 = arith.constant 0 : i32
    %c0_i32_1 = arith.constant 0 : i32
    return %c0_i32, %c0_i32_0 : i32, i32
  }
  func.func @transform_9(%arg0: i32) -> (i32, i32) {
    %c0_i32 = arith.constant 0 : i32
    %c0_i32_0 = arith.constant 0 : i32
    return %arg0, %c0_i32 : i32, i32
  }
}

</mosaic_0001>

<bundles_post_ra>
// kernel: my_network_forward.1
= control target key start
LH: loop header
LB: loop body
LE: loop exit
PB: predicated region body
PF: predicated region fallthrough
CT: control target
= control target key end

     0   :  { %14 = vsyncpa [#allocation3], 0  ;;  %s3188_s0 = inlined_call_operand.vmem [shape: bf16[16,256], index: 0, kind: input, shape index: {}]   ;;  %s3189_s1 = inlined_call_operand.hbm [shape: bf16[256,1024], index: 1, kind: input, shape index: {}]   ;;  %s3190_s2 = inlined_call_operand.vmem [shape: f32[1,256], index: 2, kind: input, shape index: {}]   ;;  %s3191_s3 = inlined_call_operand.hbm [shape: bf16[256,512], index: 3, kind: input, shape index: {}]   ;;  %s3192_s4 = inlined_call_operand.vmem [shape: f32[1,128], index: 4, kind: input, shape index: {}]   ;;  %s3193_s5 = inlined_call_operand.vmem [shape: bf16[128,128], index: 5, kind: input, shape index: {}]   ;;  %s3194_s6 = inlined_call_operand.vmem [shape: f32[1,128], index: 6, kind: input, shape index: {}]   ;;  %s3195_s7 = inlined_call_operand.hbm [shape: bf16[128,128], index: 7, kind: input, shape index: {}]   ;;  %s3196_s8 = inlined_call_operand.vmem [shape: f32[1,128], index: 8, kind: input, shape index: {}]   ;;  %s3197_s9 = inlined_call_operand.vmem [shape: f32[16,128], index: 9, kind: output, shape index: {}]  }
   0x1   :  { %15 = vsyncpa [#allocation5], 0  ;;  %s37_s11 = sshll.u32 %s3191_s3, 4  ;;  %s2970_s12 = smov [#allocation4]   ;;  %s38_s11 = int_to_ptr.hbm [resolvable:$true] %s37_s11 }
   0x2   :  { %s39_s13 = sshll.u32 %s2970_s12, 4  ;;  %s22_s16 = sshll.u32 %s3189_s1, 4  ;;  %s40_s13 = int_to_ptr.vmem [resolvable:$true] %s39_s13  ;;  %s23_s16 = int_to_ptr.hbm [resolvable:$true] %s22_s16 }
   0x3   :  { %s2971_s17 = smov 256   ;;  %s2972_s18 = smov 16  }
   0x4   :  { %45 = dma.hbm_to_vmem [thread:$0]  %s38_s11, 8192, %s40_s13, [#allocation5], %s2971_s17, %s2971_s17, %s2972_s18  }
   0x5   :  { %s2973_s19 = smov [#allocation2]   ;;  %s2974_s21 = smov 512  }
   0x6   :  { %s24_s20 = sshll.u32 %s2973_s19, 4  ;;  %s2975_s22 = smov 32   ;;  %s25_s20 = int_to_ptr.vmem [resolvable:$true] %s24_s20 }
   0x7   :  { %30 = dma.hbm_to_vmem [thread:$0]  %s23_s16, 16384, %s25_s20, [#allocation3], %s2974_s21, %s2974_s21, %s2975_s22  }
   0x8   :  { %s56_s24 = sshll.u32 %s3195_s7, 4  ;;  %s2976_s25 = smov [#allocation6]   ;;  %s57_s24 = int_to_ptr.hbm [resolvable:$true] %s56_s24 }
   0x9   :  { %s58_s26 = sshll.u32 %s2976_s25, 4  ;;  %s2977_s27 = smov 64   ;;  %s59_s26 = int_to_ptr.vmem [resolvable:$true] %s58_s26 }
   0xa   :  { %s2978_s1 = smov 4  }
   0xb   :  { %64 = dma.hbm_to_vmem [thread:$0]  %s57_s24, 1024, %s59_s26, [#allocation5], %s2977_s27, %s2977_s27, %s2978_s1  }
   0xc   :  { %2966 = dma.done.wait [#allocation3], 16384  }
   0xd   :  { %2967 = vsyncadd [#allocation3], 4294950912 }
   0xe   :  { %2968 = dma.done.wait [#allocation5], 9216  }
   0xf   :  { %2969 = vsyncadd [#allocation5], 4294958080  ;;  %v2058_v0 = vld [vmem:[#allocation2 + $0x1c0] sm:$0xf]  ;;  %v2722_v5 = vld [vmem:[#allocation2 + $0x1c4] sm:$0xf] }
  0x10   :  { %v2726_v1 = vld [vmem:[#allocation2 + $0x1dc] sm:$0xf0]  ;;  %v2060_v6 = vld [vmem:[#allocation2 + $0x1e0] sm:$0xf0] }
  0x11   :  { %v2314_v2 = vld [vmem:[#allocation2 + $0x3c0] sm:$0xf]  ;;  %v2059_v3 = vor.u32 %v2726_v1, %v2058_v0  ;;  %v2063_v8 = vor.u32 %v2722_v5, %v2060_v6  ;;  %v2786_v9 = vld [vmem:[#allocation2 + $0x3c4] sm:$0xf] }
  0x12   :  { %v2790_v4 = vld [vmem:[#allocation2 + $0x3dc] sm:$0xf0]  ;;  %v2316_v10 = vld [vmem:[#allocation2 + $0x3e0] sm:$0xf0] }
  0x13   :  { %v2315_v7 = vor.u32 %v2790_v4, %v2314_v2  ;;  %v2026_v11 = vld [vmem:[#allocation2 + $0x180] sm:$0xf]  ;;  %859 = vmatpush.bf16.msra.mxu0 %v2059_v3  ;;  %v2319_v12 = vor.u32 %v2786_v9, %v2316_v10  ;;  %887 = vmatpush.bf16.msra.mxu2 %v2063_v8  ;;  %v2714_v18 = vld [vmem:[#allocation2 + $0x184] sm:$0xf] }
  0x14   :  { %v2718_v13 = vld [vmem:[#allocation2 + $0x19c] sm:$0xf0]  ;;  %v2028_v19 = vld [vmem:[#allocation2 + $0x1a0] sm:$0xf0] }
  0x15   :  { %v2282_v14 = vld [vmem:[#allocation2 + $0x380] sm:$0xf]  ;;  %873 = vmatpush.bf16.msra.mxu1 %v2315_v7  ;;  %v2027_v16 = vor.u32 %v2718_v13, %v2026_v11  ;;  %v2778_v20 = vld [vmem:[#allocation2 + $0x384] sm:$0xf]  ;;  %901 = vmatpush.bf16.msra.mxu3 %v2319_v12  ;;  %v2031_v21 = vor.u32 %v2714_v18, %v2028_v19 }
  0x16   :  { %v2782_v15 = vld [vmem:[#allocation2 + $0x39c] sm:$0xf0]  ;;  %v2284_v22 = vld [vmem:[#allocation2 + $0x3a0] sm:$0xf0] }
  0x17   :  { %v2283_v17 = vor.u32 %v2782_v15, %v2282_v14  ;;  %v1994_v23 = vld [vmem:[#allocation2 + $0x140] sm:$0xf]  ;;  %v2287_v25 = vor.u32 %v2778_v20, %v2284_v22  ;;  %v2706_v28 = vld [vmem:[#allocation2 + $0x144] sm:$0xf]  ;;  %860 = vmatpush.bf16.msra.mxu0 %v2027_v16  ;;  %888 = vmatpush.bf16.msra.mxu2 %v2031_v21 }
  0x18   :  { %v2710_v24 = vld [vmem:[#allocation2 + $0x15c] sm:$0xf0]  ;;  %v1996_v30 = vld [vmem:[#allocation2 + $0x160] sm:$0xf0] }
  0x19   :  { %v2250_v26 = vld [vmem:[#allocation2 + $0x340] sm:$0xf]  ;;  %v1995_v29 = vor.u32 %v2710_v24, %v1994_v23  ;;  %v2770_v31 = vld [vmem:[#allocation2 + $0x344] sm:$0xf]  ;;  %874 = vmatpush.bf16.msra.mxu1 %v2283_v17  ;;  %v1999_v34 = vor.u32 %v2706_v28, %v1996_v30  ;;  %902 = vmatpush.bf16.msra.mxu3 %v2287_v25  ;;  %v2066_v28 = vld [vmem:[#allocation2 + $0x1c8] sm:$0xf] }
  0x1a   :  { %v2774_v27 = vld [vmem:[#allocation2 + $0x35c] sm:$0xf0]  ;;  %v2252_v32 = vld [vmem:[#allocation2 + $0x360] sm:$0xf0]  ;;  %v2322_v30 = vld [vmem:[#allocation2 + $0x3c8] sm:$0xf] }
  0x1b   :  { %v2251_v33 = vor.u32 %v2774_v27, %v2250_v26  ;;  %v1962_v35 = vld [vmem:[#allocation2 + $0x100] sm:$0xf]  ;;  %v2255_v38 = vor.u32 %v2770_v31, %v2252_v32  ;;  %v2698_v40 = vld [vmem:[#allocation2 + $0x104] sm:$0xf]  ;;  %861 = vmatpush.bf16.msra.mxu0 %v1995_v29  ;;  %889 = vmatpush.bf16.msra.mxu2 %v1999_v34  ;;  %v2727_v29 = vld [vmem:[#allocation2 + $0x1e4] sm:$0xf0] }
  0x1c   :  { %v2702_v36 = vld [vmem:[#allocation2 + $0x11c] sm:$0xf0]  ;;  %v1964_v41 = vld [vmem:[#allocation2 + $0x120] sm:$0xf0]  ;;  %v2791_v32 = vld [vmem:[#allocation2 + $0x3e4] sm:$0xf0] }
  0x1d   :  { %v2218_v37 = vld [vmem:[#allocation2 + $0x300] sm:$0xf]  ;;  %v2762_v42 = vld [vmem:[#allocation2 + $0x304] sm:$0xf]  ;;  %v1963_v44 = vor.u32 %v2702_v36, %v1962_v35  ;;  %875 = vmatpush.bf16.msra.mxu1 %v2251_v33  ;;  %v1967_v46 = vor.u32 %v2698_v40, %v1964_v41  ;;  %903 = vmatpush.bf16.msra.mxu3 %v2255_v38  ;;  %v2723_v33 = vld [vmem:[#allocation2 + $0x1cc] sm:$0xf]  ;;  %v2067_v40 = vor.u32 %v2727_v29, %v2066_v28 }
  0x1e   :  { %v2766_v39 = vld [vmem:[#allocation2 + $0x31c] sm:$0xf0]  ;;  %v2220_v43 = vld [vmem:[#allocation2 + $0x320] sm:$0xf0]  ;;  %v2068_v34 = vld [vmem:[#allocation2 + $0x1e8] sm:$0xf0] }
  0x1f   :  { %v2219_v45 = vor.u32 %v2766_v39, %v2218_v37  ;;  %v1930_v47 = vld [vmem:[#allocation2 + $0xc0] sm:$0xf]  ;;  %v2223_v50 = vor.u32 %v2762_v42, %v2220_v43  ;;  %v2690_v52 = vld [vmem:[#allocation2 + $0xc4] sm:$0xf]  ;;  %862 = vmatpush.bf16.msra.mxu0 %v1963_v44  ;;  %890 = vmatpush.bf16.msra.mxu2 %v1967_v46  ;;  %v2787_v37 = vld [vmem:[#allocation2 + $0x3cc] sm:$0xf]  ;;  %v2323_v43 = vor.u32 %v2791_v32, %v2322_v30 }
  0x20   :  { %v2694_v48 = vld [vmem:[#allocation2 + $0xdc] sm:$0xf0]  ;;  %v1932_v53 = vld [vmem:[#allocation2 + $0xe0] sm:$0xf0]  ;;  %v2324_v38 = vld [vmem:[#allocation2 + $0x3e8] sm:$0xf0]  ;;  %v2071_v44 = vor.u32 %v2723_v33, %v2068_v34 }
  0x21   :  { %v2186_v49 = vld [vmem:[#allocation2 + $0x2c0] sm:$0xf]  ;;  %v2754_v54 = vld [vmem:[#allocation2 + $0x2c4] sm:$0xf]  ;;  %v1931_v56 = vor.u32 %v2694_v48, %v1930_v47  ;;  %876 = vmatpush.bf16.msra.mxu1 %v2219_v45  ;;  %v1935_v58 = vor.u32 %v2690_v52, %v1932_v53  ;;  %904 = vmatpush.bf16.msra.mxu3 %v2223_v50  ;;  %v2034_v41 = vld [vmem:[#allocation2 + $0x188] sm:$0xf]  ;;  %v2327_v48 = vor.u32 %v2787_v37, %v2324_v38 }
  0x22   :  { %v2758_v51 = vld [vmem:[#allocation2 + $0x2dc] sm:$0xf0]  ;;  %v2188_v55 = vld [vmem:[#allocation2 + $0x2e0] sm:$0xf0]  ;;  %v2719_v42 = vld [vmem:[#allocation2 + $0x1a4] sm:$0xf0] }
  0x23   :  { %v2187_v57 = vor.u32 %v2758_v51, %v2186_v49  ;;  %v1898_v59 = vld [vmem:[#allocation2 + $0x80] sm:$0xf]  ;;  %v2191_v62 = vor.u32 %v2754_v54, %v2188_v55  ;;  %v2682_v0 = vld [vmem:[#allocation2 + $0x84] sm:$0xf]  ;;  %863 = vmatpush.bf16.msra.mxu0 %v1931_v56  ;;  %891 = vmatpush.bf16.msra.mxu2 %v1935_v58  ;;  %v2290_v45 = vld [vmem:[#allocation2 + $0x388] sm:$0xf]  ;;  %v2035_v55 = vor.u32 %v2719_v42, %v2034_v41 }
  0x24   :  { %v2686_v60 = vld [vmem:[#allocation2 + $0x9c] sm:$0xf0]  ;;  %v1900_v1 = vld [vmem:[#allocation2 + $0xa0] sm:$0xf0]  ;;  %v2783_v46 = vld [vmem:[#allocation2 + $0x3a4] sm:$0xf0] }
  0x25   :  { %v2154_v61 = vld [vmem:[#allocation2 + $0x280] sm:$0xf]  ;;  %v2746_v2 = vld [vmem:[#allocation2 + $0x284] sm:$0xf]  ;;  %v1899_v4 = vor.u32 %v2686_v60, %v1898_v59  ;;  %877 = vmatpush.bf16.msra.mxu1 %v2187_v57  ;;  %v1903_v6 = vor.u32 %v2682_v0, %v1900_v1  ;;  %905 = vmatpush.bf16.msra.mxu3 %v2191_v62  ;;  %v2715_v47 = vld [vmem:[#allocation2 + $0x18c] sm:$0xf]  ;;  %v2291_v58 = vor.u32 %v2783_v46, %v2290_v45 }
  0x26   :  { %v2750_v63 = vld [vmem:[#allocation2 + $0x29c] sm:$0xf0]  ;;  %v2156_v3 = vld [vmem:[#allocation2 + $0x2a0] sm:$0xf0]  ;;  %v2036_v49 = vld [vmem:[#allocation2 + $0x1a8] sm:$0xf0] }
  0x27   :  { %v2155_v5 = vor.u32 %v2750_v63, %v2154_v61  ;;  %v1866_v7 = vld [vmem:[#allocation2 + $0x40] sm:$0xf]  ;;  %v2159_v10 = vor.u32 %v2746_v2, %v2156_v3  ;;  %v2674_v12 = vld [vmem:[#allocation2 + $0x44] sm:$0xf]  ;;  %864 = vmatpush.bf16.msra.mxu0 %v1899_v4  ;;  %892 = vmatpush.bf16.msra.mxu2 %v1903_v6  ;;  %v2779_v50 = vld [vmem:[#allocation2 + $0x38c] sm:$0xf]  ;;  %v2039_v59 = vor.u32 %v2715_v47, %v2036_v49 }
  0x28   :  { %v2678_v8 = vld [vmem:[#allocation2 + $0x5c] sm:$0xf0]  ;;  %v1868_v13 = vld [vmem:[#allocation2 + $0x60] sm:$0xf0]  ;;  %v2292_v51 = vld [vmem:[#allocation2 + $0x3a8] sm:$0xf0] }
  0x29   :  { %v2122_v9 = vld [vmem:[#allocation2 + $0x240] sm:$0xf]  ;;  %v2738_v14 = vld [vmem:[#allocation2 + $0x244] sm:$0xf]  ;;  %v1867_v16 = vor.u32 %v2678_v8, %v1866_v7  ;;  %878 = vmatpush.bf16.msra.mxu1 %v2155_v5  ;;  %v1871_v20 = vor.u32 %v2674_v12, %v1868_v13  ;;  %906 = vmatpush.bf16.msra.mxu3 %v2159_v10  ;;  %v2665_v53 = vld [vmem:[%s3188_s0 + $0x4] sm:$0xf0]  ;;  %v2295_v0 = vor.u32 %v2779_v50, %v2292_v51 }
  0x2a   :  { %v2742_v11 = vld [vmem:[#allocation2 + $0x25c] sm:$0xf0]  ;;  %v2124_v15 = vld [vmem:[#allocation2 + $0x260] sm:$0xf0]  ;;  %v1828_v57 = vld [vmem:[%s3188_s0 + $0x8] sm:$0xf0] }
  0x2b   :  { %v1834_v17 = vld [vmem:[#allocation2] sm:$0xf]  ;;  %v2123_v19 = vor.u32 %v2742_v11, %v2122_v9  ;;  %v2666_v23 = vld [vmem:[#allocation2 + $0x4] sm:$0xf]  ;;  %v2127_v24 = vor.u32 %v2738_v14, %v2124_v15  ;;  %865 = vmatpush.bf16.msra.mxu0 %v1867_v16  ;;  %893 = vmatpush.bf16.msra.mxu2 %v1871_v20  ;;  %v2002_v60 = vld [vmem:[#allocation2 + $0x148] sm:$0xf] }
  0x2c   :  { %v2670_v18 = vld [vmem:[#allocation2 + $0x1c] sm:$0xf0]  ;;  %v1836_v25 = vld [vmem:[#allocation2 + $0x20] sm:$0xf0]  ;;  %v2711_v61 = vld [vmem:[#allocation2 + $0x164] sm:$0xf0] }
  0x2d   :  { %v2090_v21 = vld [vmem:[#allocation2 + $0x200] sm:$0xf]  ;;  %v2730_v26 = vld [vmem:[#allocation2 + $0x204] sm:$0xf]  ;;  %v1835_v31 = vor.u32 %v2670_v18, %v1834_v17  ;;  %879 = vmatpush.bf16.msra.mxu1 %v2123_v19  ;;  %v1839_v36 = vor.u32 %v2666_v23, %v1836_v25  ;;  %907 = vmatpush.bf16.msra.mxu3 %v2127_v24  ;;  %v2258_v62 = vld [vmem:[#allocation2 + $0x348] sm:$0xf]  ;;  %v2003_v6 = vor.u32 %v2711_v61, %v2002_v60 }
  0x2e   :  { %v2734_v22 = vld [vmem:[#allocation2 + $0x21c] sm:$0xf0]  ;;  %v2092_v27 = vld [vmem:[#allocation2 + $0x220] sm:$0xf0]  ;;  %v2775_v1 = vld [vmem:[#allocation2 + $0x364] sm:$0xf0] }
  0x2f   :  { %v2091_v35 = vor.u32 %v2734_v22, %v2090_v21  ;;  %v2095_v39 = vor.u32 %v2730_v26, %v2092_v27  ;;  %866 = vmatpush.bf16.msra.mxu0 %v1835_v31  ;;  %894 = vmatpush.bf16.msra.mxu2 %v1839_v36  ;;  %v1826_v52 = vld [vmem:[%s3188_s0] sm:$0xf]  ;;  %v2664_v54 = vld [vmem:[%s3188_s0 + $0x4] sm:$0xf]  ;;  %v2707_v2 = vld [vmem:[#allocation2 + $0x14c] sm:$0xf]  ;;  %v2259_v7 = vor.u32 %v2775_v1, %v2258_v62 }
  0x30   :  { %v3047_v56 = vor.u32 %v2665_v53, %v1826_v52  ;;  %v3052_v63 = vor.u32 %v2664_v54, %v1828_v57  ;;  %v2004_v3 = vld [vmem:[#allocation2 + $0x168] sm:$0xf0]  ;;  %v1970_v9 = vld [vmem:[#allocation2 + $0x108] sm:$0xf] }
  0x31   :  { %880 = vmatpush.bf16.msra.mxu1 %v2091_v35  ;;  %908 = vmatpush.bf16.msra.mxu3 %v2095_v39  ;;  %v2771_v4 = vld [vmem:[#allocation2 + $0x34c] sm:$0xf]  ;;  %v2007_v8 = vor.u32 %v2707_v2, %v2004_v3  ;;  %v2703_v10 = vld [vmem:[#allocation2 + $0x124] sm:$0xf0] }
  0x32   :  { %867 = vmatmul.bf16.vlgmr.msra.gmra.mxu0 %v3047_v56  ;;  %v2260_v5 = vld [vmem:[#allocation2 + $0x368] sm:$0xf0]  ;;  %895 = vmatmul.bf16.vlgmr.msra.gmra.mxu2 %v3047_v56  ;;  %v2226_v11 = vld [vmem:[#allocation2 + $0x308] sm:$0xf]  ;;  %v1971_v18 = vor.u32 %v2703_v10, %v1970_v9  ;;  %v2724_v9 = vld [vmem:[#allocation2 + $0x1d4] sm:$0xf] }
  0x33   :  { %915 = vmatpush.bf16.msrb.mxu0 %v2067_v40  ;;  %943 = vmatpush.bf16.msrb.mxu2 %v2071_v44  ;;  %v2263_v12 = vor.u32 %v2771_v4, %v2260_v5  ;;  %v2767_v13 = vld [vmem:[#allocation2 + $0x324] sm:$0xf0]  ;;  %v2699_v14 = vld [vmem:[#allocation2 + $0x10c] sm:$0xf]  ;;  %v2074_v4 = vld [vmem:[#allocation2 + $0x1d0] sm:$0xf] }
  0x34   :  { %881 = vmatmul.bf16.vlgmr.msra.gmra.mxu1 %v3052_v63  ;;  %909 = vmatmul.bf16.vlgmr.msra.gmra.mxu3 %v3052_v63  ;;  %v1972_v15 = vld [vmem:[#allocation2 + $0x128] sm:$0xf0]  ;;  %v2227_v19 = vor.u32 %v2767_v13, %v2226_v11  ;;  %v1938_v21 = vld [vmem:[#allocation2 + $0xc8] sm:$0xf]  ;;  %v2728_v5 = vld [vmem:[#allocation2 + $0x1ec] sm:$0xf0] }
  0x35   :  { %929 = vmatpush.bf16.msrb.mxu1 %v2323_v43  ;;  %957 = vmatpush.bf16.msrb.mxu3 %v2327_v48  ;;  %v2763_v16 = vld [vmem:[#allocation2 + $0x30c] sm:$0xf]  ;;  %v1975_v20 = vor.u32 %v2699_v14, %v1972_v15  ;;  %v2695_v22 = vld [vmem:[#allocation2 + $0xe4] sm:$0xf0]  ;;  %v2076_v10 = vld [vmem:[#allocation2 + $0x1f0] sm:$0xf0] }
  0x36   :  { %v2228_v17 = vld [vmem:[#allocation2 + $0x328] sm:$0xf0]  ;;  %v2194_v23 = vld [vmem:[#allocation2 + $0x2c8] sm:$0xf]  ;;  %v1939_v30 = vor.u32 %v2695_v22, %v1938_v21  ;;  %v2788_v13 = vld [vmem:[#allocation2 + $0x3d4] sm:$0xf] }
  0x37   :  { %916 = vmatpush.bf16.msrb.mxu0 %v2035_v55  ;;  %944 = vmatpush.bf16.msrb.mxu2 %v2039_v59  ;;  %v2231_v24 = vor.u32 %v2763_v16, %v2228_v17  ;;  %v2759_v25 = vld [vmem:[#allocation2 + $0x2e4] sm:$0xf0]  ;;  %v2691_v26 = vld [vmem:[#allocation2 + $0xcc] sm:$0xf]  ;;  %v2332_v14 = vld [vmem:[#allocation2 + $0x3f0] sm:$0xf0]  ;;  %v2075_v16 = vor.u32 %v2728_v5, %v2074_v4 }
  0x38   :  { %v1940_v27 = vld [vmem:[#allocation2 + $0xe8] sm:$0xf0]  ;;  %v2195_v31 = vor.u32 %v2759_v25, %v2194_v23  ;;  %v1906_v33 = vld [vmem:[#allocation2 + $0x88] sm:$0xf]  ;;  %v2298_v21 = vld [vmem:[#allocation2 + $0x390] sm:$0xf]  ;;  %v2335_v22 = vor.u32 %v2788_v13, %v2332_v14 }
  0x39   :  { %930 = vmatpush.bf16.msrb.mxu1 %v2291_v58  ;;  %958 = vmatpush.bf16.msrb.mxu3 %v2295_v0  ;;  %v2755_v28 = vld [vmem:[#allocation2 + $0x2cc] sm:$0xf]  ;;  %v1943_v32 = vor.u32 %v2691_v26, %v1940_v27  ;;  %v2687_v34 = vld [vmem:[#allocation2 + $0xa4] sm:$0xf0]  ;;  %v2784_v23 = vld [vmem:[#allocation2 + $0x3ac] sm:$0xf0] }
  0x3a   :  { %v2196_v29 = vld [vmem:[#allocation2 + $0x2e8] sm:$0xf0]  ;;  %v2162_v35 = vld [vmem:[#allocation2 + $0x288] sm:$0xf]  ;;  %v1907_v42 = vor.u32 %v2687_v34, %v1906_v33  ;;  %v2044_v25 = vld [vmem:[#allocation2 + $0x1b0] sm:$0xf0] }
  0x3b   :  { %917 = vmatpush.bf16.msrb.mxu0 %v2003_v6  ;;  %945 = vmatpush.bf16.msrb.mxu2 %v2007_v8  ;;  %v2199_v36 = vor.u32 %v2755_v28, %v2196_v29  ;;  %v2751_v37 = vld [vmem:[#allocation2 + $0x2a4] sm:$0xf0]  ;;  %v2683_v38 = vld [vmem:[#allocation2 + $0x8c] sm:$0xf]  ;;  %v2330_v6 = vld [vmem:[#allocation2 + $0x3d0] sm:$0xf]  ;;  %v2299_v29 = vor.u32 %v2784_v23, %v2298_v21 }
  0x3c   :  { %v1908_v39 = vld [vmem:[#allocation2 + $0xa8] sm:$0xf0]  ;;  %v2163_v43 = vor.u32 %v2751_v37, %v2162_v35  ;;  %v1874_v45 = vld [vmem:[#allocation2 + $0x48] sm:$0xf]  ;;  %v2792_v8 = vld [vmem:[#allocation2 + $0x3ec] sm:$0xf0] }
  0x3d   :  { %931 = vmatpush.bf16.msrb.mxu1 %v2259_v7  ;;  %959 = vmatpush.bf16.msrb.mxu3 %v2263_v12  ;;  %v2747_v40 = vld [vmem:[#allocation2 + $0x28c] sm:$0xf]  ;;  %v1911_v44 = vor.u32 %v2683_v38, %v1908_v39  ;;  %v2679_v46 = vld [vmem:[#allocation2 + $0x64] sm:$0xf0]  ;;  %v2331_v17 = vor.u32 %v2792_v8, %v2330_v6  ;;  %v2780_v26 = vld [vmem:[#allocation2 + $0x394] sm:$0xf] }
  0x3e   :  { %v2164_v41 = vld [vmem:[#allocation2 + $0x2a8] sm:$0xf0]  ;;  %v2130_v47 = vld [vmem:[#allocation2 + $0x248] sm:$0xf]  ;;  %v1875_v54 = vor.u32 %v2679_v46, %v1874_v45  ;;  %v2300_v27 = vld [vmem:[#allocation2 + $0x3b0] sm:$0xf0] }
  0x3f   :  { %918 = vmatpush.bf16.msrb.mxu0 %v1971_v18  ;;  %946 = vmatpush.bf16.msrb.mxu2 %v1975_v20  ;;  %v2167_v48 = vor.u32 %v2747_v40, %v2164_v41  ;;  %v2743_v49 = vld [vmem:[#allocation2 + $0x264] sm:$0xf0]  ;;  %v2675_v50 = vld [vmem:[#allocation2 + $0x4c] sm:$0xf]  ;;  %v2079_v18 = vor.u32 %v2724_v9, %v2076_v10  ;;  %v2720_v20 = vld [vmem:[#allocation2 + $0x1ac] sm:$0xf0]  ;;  %v2303_v34 = vor.u32 %v2780_v26, %v2300_v27 }
  0x40   :  { %v1876_v51 = vld [vmem:[#allocation2 + $0x68] sm:$0xf0]  ;;  %v1842_v55 = vld [vmem:[#allocation2 + $0x8] sm:$0xf]  ;;  %v2131_v58 = vor.u32 %v2743_v49, %v2130_v47  ;;  %v2266_v33 = vld [vmem:[#allocation2 + $0x350] sm:$0xf] }
  0x41   :  { %932 = vmatpush.bf16.msrb.mxu1 %v2227_v19  ;;  %960 = vmatpush.bf16.msrb.mxu3 %v2231_v24  ;;  %v2739_v52 = vld [vmem:[#allocation2 + $0x24c] sm:$0xf]  ;;  %v2671_v57 = vld [vmem:[#allocation2 + $0x24] sm:$0xf0]  ;;  %v1879_v59 = vor.u32 %v2675_v50, %v1876_v51  ;;  %v2042_v19 = vld [vmem:[#allocation2 + $0x190] sm:$0xf] }
  0x42   :  { %v2132_v53 = vld [vmem:[#allocation2 + $0x268] sm:$0xf0]  ;;  %v2098_v60 = vld [vmem:[#allocation2 + $0x208] sm:$0xf]  ;;  %v1843_v7 = vor.u32 %v2671_v57, %v1842_v55  ;;  %v2716_v24 = vld [vmem:[#allocation2 + $0x194] sm:$0xf]  ;;  %v2043_v28 = vor.u32 %v2720_v20, %v2042_v19 }
  0x43   :  { %919 = vmatpush.bf16.msrb.mxu0 %v1939_v30  ;;  %947 = vmatpush.bf16.msrb.mxu2 %v1943_v32  ;;  %v2735_v61 = vld [vmem:[#allocation2 + $0x224] sm:$0xf0]  ;;  %v2667_v62 = vld [vmem:[#allocation2 + $0xc] sm:$0xf]  ;;  %v2135_v0 = vor.u32 %v2739_v52, %v2132_v53  ;;  %v2047_v30 = vor.u32 %v2716_v24, %v2044_v25  ;;  %v2712_v32 = vld [vmem:[#allocation2 + $0x16c] sm:$0xf0] }
  0x44   :  { %v1844_v1 = vld [vmem:[#allocation2 + $0x28] sm:$0xf0]  ;;  %v2099_v11 = vor.u32 %v2735_v61, %v2098_v60  ;;  %v2776_v35 = vld [vmem:[#allocation2 + $0x36c] sm:$0xf0]  ;;  %v2012_v37 = vld [vmem:[#allocation2 + $0x170] sm:$0xf0] }
  0x45   :  { %933 = vmatpush.bf16.msrb.mxu1 %v2195_v31  ;;  %961 = vmatpush.bf16.msrb.mxu3 %v2199_v36  ;;  %v2731_v2 = vld [vmem:[#allocation2 + $0x20c] sm:$0xf]  ;;  %v1847_v12 = vor.u32 %v2667_v62, %v1844_v1  ;;  %v2010_v31 = vld [vmem:[#allocation2 + $0x150] sm:$0xf]  ;;  %v2708_v36 = vld [vmem:[#allocation2 + $0x154] sm:$0xf]  ;;  %v2267_v41 = vor.u32 %v2776_v35, %v2266_v33 }
  0x46   :  { %v2100_v3 = vld [vmem:[#allocation2 + $0x228] sm:$0xf0]  ;;  %v2772_v38 = vld [vmem:[#allocation2 + $0x354] sm:$0xf]  ;;  %v2011_v40 = vor.u32 %v2712_v32, %v2010_v31  ;;  %v2234_v45 = vld [vmem:[#allocation2 + $0x310] sm:$0xf] }
  0x47   :  { %920 = vmatpush.bf16.msrb.mxu0 %v1907_v42  ;;  %948 = vmatpush.bf16.msrb.mxu2 %v1911_v44  ;;  %v2103_v15 = vor.u32 %v2731_v2, %v2100_v3  ;;  %v2268_v39 = vld [vmem:[#allocation2 + $0x370] sm:$0xf0]  ;;  %v2015_v42 = vor.u32 %v2708_v36, %v2012_v37  ;;  %v2704_v44 = vld [vmem:[#allocation2 + $0x12c] sm:$0xf0] }
  0x48   :  { %v2271_v46 = vor.u32 %v2772_v38, %v2268_v39  ;;  %v2768_v47 = vld [vmem:[#allocation2 + $0x32c] sm:$0xf0]  ;;  %v1980_v49 = vld [vmem:[#allocation2 + $0x130] sm:$0xf0]  ;;  %v2082_v38 = vld [vmem:[#allocation2 + $0x1d8] sm:$0xf] }
  0x49   :  { %934 = vmatpush.bf16.msrb.mxu1 %v2163_v43  ;;  %962 = vmatpush.bf16.msrb.mxu3 %v2167_v48  ;;  %v1978_v43 = vld [vmem:[#allocation2 + $0x110] sm:$0xf]  ;;  %v2700_v48 = vld [vmem:[#allocation2 + $0x114] sm:$0xf]  ;;  %v2235_v53 = vor.u32 %v2768_v47, %v2234_v45  ;;  %v2729_v39 = vld [vmem:[#allocation2 + $0x1f4] sm:$0xf0] }
  0x4a   :  { %v2764_v50 = vld [vmem:[#allocation2 + $0x314] sm:$0xf]  ;;  %v1979_v52 = vor.u32 %v2704_v44, %v1978_v43  ;;  %v1946_v55 = vld [vmem:[#allocation2 + $0xd0] sm:$0xf]  ;;  %v2725_v43 = vld [vmem:[#allocation2 + $0x1dc] sm:$0xf] }
  0x4b   :  { %921 = vmatpush.bf16.msrb.mxu0 %v1875_v54  ;;  %949 = vmatpush.bf16.msrb.mxu2 %v1879_v59  ;;  %v2236_v51 = vld [vmem:[#allocation2 + $0x330] sm:$0xf0]  ;;  %v1983_v54 = vor.u32 %v2700_v48, %v1980_v49  ;;  %v2696_v57 = vld [vmem:[#allocation2 + $0xec] sm:$0xf0]  ;;  %v2084_v44 = vld [vmem:[#allocation2 + $0x1f8] sm:$0xf0] }
  0x4c   :  { %v2239_v59 = vor.u32 %v2764_v50, %v2236_v51  ;;  %v2760_v60 = vld [vmem:[#allocation2 + $0x2ec] sm:$0xf0]  ;;  %v2692_v61 = vld [vmem:[#allocation2 + $0xd4] sm:$0xf]  ;;  %v1947_v2 = vor.u32 %v2696_v57, %v1946_v55  ;;  %v2789_v47 = vld [vmem:[#allocation2 + $0x3dc] sm:$0xf]  ;;  %v2083_v50 = vor.u32 %v2729_v39, %v2082_v38 }
  0x4d   :  { %935 = vmatpush.bf16.msrb.mxu1 %v2131_v58  ;;  %963 = vmatpush.bf16.msrb.mxu3 %v2135_v0  ;;  %v2202_v58 = vld [vmem:[#allocation2 + $0x2d0] sm:$0xf]  ;;  %v1948_v62 = vld [vmem:[#allocation2 + $0xf0] sm:$0xf0]  ;;  %v2340_v48 = vld [vmem:[#allocation2 + $0x3f8] sm:$0xf0] }
  0x4e   :  { %v2756_v0 = vld [vmem:[#allocation2 + $0x2d4] sm:$0xf]  ;;  %v2203_v3 = vor.u32 %v2760_v60, %v2202_v58  ;;  %v1951_v4 = vor.u32 %v2692_v61, %v1948_v62  ;;  %v1914_v5 = vld [vmem:[#allocation2 + $0x90] sm:$0xf]  ;;  %v2306_v55 = vld [vmem:[#allocation2 + $0x398] sm:$0xf]  ;;  %v2343_v57 = vor.u32 %v2789_v47, %v2340_v48 }
  0x4f   :  { %922 = vmatpush.bf16.msrb.mxu0 %v1843_v7  ;;  %950 = vmatpush.bf16.msrb.mxu2 %v1847_v12  ;;  %v2204_v1 = vld [vmem:[#allocation2 + $0x2f0] sm:$0xf0]  ;;  %v2688_v6 = vld [vmem:[#allocation2 + $0xac] sm:$0xf0]  ;;  %v2785_v58 = vld [vmem:[#allocation2 + $0x3b4] sm:$0xf0] }
  0x50   :  { %v2170_v7 = vld [vmem:[#allocation2 + $0x290] sm:$0xf]  ;;  %v2207_v8 = vor.u32 %v2756_v0, %v2204_v1  ;;  %v2684_v10 = vld [vmem:[#allocation2 + $0x94] sm:$0xf]  ;;  %v1915_v14 = vor.u32 %v2688_v6, %v1914_v5  ;;  %v2052_v60 = vld [vmem:[#allocation2 + $0x1b8] sm:$0xf0]  ;;  %v2307_v1 = vor.u32 %v2785_v58, %v2306_v55 }
  0x51   :  { %936 = vmatpush.bf16.msrb.mxu1 %v2099_v11  ;;  %964 = vmatpush.bf16.msrb.mxu3 %v2103_v15  ;;  %v2752_v9 = vld [vmem:[#allocation2 + $0x2ac] sm:$0xf0]  ;;  %v1916_v11 = vld [vmem:[#allocation2 + $0xb0] sm:$0xf0]  ;;  %v2781_v61 = vld [vmem:[#allocation2 + $0x39c] sm:$0xf] }
  0x52   :  { %923 = vmatmul.bf16.vlgmr.msrb.gmra.mxu0 %v3047_v56  ;;  %951 = vmatmul.bf16.vlgmr.msrb.gmra.mxu2 %v3047_v56  ;;  %v2748_v12 = vld [vmem:[#allocation2 + $0x294] sm:$0xf]  ;;  %v2171_v15 = vor.u32 %v2752_v9, %v2170_v7  ;;  %v2138_v19 = vld [vmem:[#allocation2 + $0x250] sm:$0xf]  ;;  %v2308_v62 = vld [vmem:[#allocation2 + $0x3b8] sm:$0xf0] }
  0x53   :  { %971 = vmatpush.bf16.msra.mxu0 %v2075_v16  ;;  %999 = vmatpush.bf16.msra.mxu2 %v2079_v18  ;;  %v2172_v13 = vld [vmem:[#allocation2 + $0x2b0] sm:$0xf0]  ;;  %v1919_v16 = vor.u32 %v2684_v10, %v1916_v11  ;;  %v2680_v18 = vld [vmem:[#allocation2 + $0x6c] sm:$0xf0]  ;;  %v2274_v5 = vld [vmem:[#allocation2 + $0x358] sm:$0xf]  ;;  %v2311_v6 = vor.u32 %v2781_v61, %v2308_v62 }
  0x54   :  { %937 = vmatmul.bf16.vlgmr.msrb.gmra.mxu1 %v3052_v63  ;;  %965 = vmatmul.bf16.vlgmr.msrb.gmra.mxu3 %v3052_v63  ;;  %v2175_v20 = vor.u32 %v2748_v12, %v2172_v13  ;;  %v2744_v21 = vld [vmem:[#allocation2 + $0x26c] sm:$0xf0]  ;;  %v1884_v23 = vld [vmem:[#allocation2 + $0x70] sm:$0xf0]  ;;  %v2777_v7 = vld [vmem:[#allocation2 + $0x374] sm:$0xf0] }
  0x55   :  { %985 = vmatpush.bf16.msra.mxu1 %v2331_v17  ;;  %1013 = vmatpush.bf16.msra.mxu3 %v2335_v22  ;;  %v1882_v17 = vld [vmem:[#allocation2 + $0x50] sm:$0xf]  ;;  %v2676_v22 = vld [vmem:[#allocation2 + $0x54] sm:$0xf]  ;;  %v2020_v9 = vld [vmem:[#allocation2 + $0x178] sm:$0xf0]  ;;  %v2275_v13 = vor.u32 %v2777_v7, %v2274_v5 }
  0x56   :  { %v2740_v24 = vld [vmem:[#allocation2 + $0x254] sm:$0xf]  ;;  %v1883_v26 = vor.u32 %v2680_v18, %v1882_v17  ;;  %v1850_v27 = vld [vmem:[#allocation2 + $0x10] sm:$0xf]  ;;  %v2773_v10 = vld [vmem:[#allocation2 + $0x35c] sm:$0xf] }
  0x57   :  { %972 = vmatpush.bf16.msra.mxu0 %v2043_v28  ;;  %1000 = vmatpush.bf16.msra.mxu2 %v2047_v30  ;;  %v2140_v25 = vld [vmem:[#allocation2 + $0x270] sm:$0xf0]  ;;  %v2672_v28 = vld [vmem:[#allocation2 + $0x2c] sm:$0xf0]  ;;  %v1887_v30 = vor.u32 %v2676_v22, %v1884_v23  ;;  %v2276_v11 = vld [vmem:[#allocation2 + $0x378] sm:$0xf0] }
  0x58   :  { %v2106_v31 = vld [vmem:[#allocation2 + $0x210] sm:$0xf]  ;;  %v2668_v33 = vld [vmem:[#allocation2 + $0x14] sm:$0xf]  ;;  %v2242_v17 = vld [vmem:[#allocation2 + $0x318] sm:$0xf]  ;;  %v2279_v18 = vor.u32 %v2773_v10, %v2276_v11 }
  0x59   :  { %986 = vmatpush.bf16.msra.mxu1 %v2299_v29  ;;  %1014 = vmatpush.bf16.msra.mxu3 %v2303_v34  ;;  %v2139_v29 = vor.u32 %v2744_v21, %v2138_v19  ;;  %v2736_v32 = vld [vmem:[#allocation2 + $0x22c] sm:$0xf0]  ;;  %v2143_v34 = vor.u32 %v2740_v24, %v2140_v25  ;;  %v1852_v35 = vld [vmem:[#allocation2 + $0x30] sm:$0xf0]  ;;  %v2769_v19 = vld [vmem:[#allocation2 + $0x334] sm:$0xf0] }
  0x5a   :  { %v2732_v36 = vld [vmem:[#allocation2 + $0x214] sm:$0xf]  ;;  %v2107_v45 = vor.u32 %v2736_v32, %v2106_v31  ;;  %v1988_v21 = vld [vmem:[#allocation2 + $0x138] sm:$0xf0]  ;;  %v2243_v25 = vor.u32 %v2769_v19, %v2242_v17  ;;  %v2761_v31 = vld [vmem:[#allocation2 + $0x2f4] sm:$0xf0] }
  0x5b   :  { %973 = vmatpush.bf16.msra.mxu0 %v2011_v40  ;;  %1001 = vmatpush.bf16.msra.mxu2 %v2015_v42  ;;  %v2108_v37 = vld [vmem:[#allocation2 + $0x230] sm:$0xf0]  ;;  %v2338_v40 = vld [vmem:[#allocation2 + $0x3d8] sm:$0xf]  ;;  %v2765_v22 = vld [vmem:[#allocation2 + $0x31c] sm:$0xf] }
  0x5c   :  { %v2793_v42 = vld [vmem:[#allocation2 + $0x3f4] sm:$0xf0]  ;;  %v2111_v49 = vor.u32 %v2732_v36, %v2108_v37  ;;  %v2244_v23 = vld [vmem:[#allocation2 + $0x338] sm:$0xf0]  ;;  %v2442_v19 = vld [vmem:[#allocation4 + $0xc0] sm:$0xf] }
  0x5d   :  { %987 = vmatpush.bf16.msra.mxu1 %v2267_v41  ;;  %1015 = vmatpush.bf16.msra.mxu3 %v2271_v46  ;;  %v1851_v41 = vor.u32 %v2672_v28, %v1850_v27  ;;  %v1855_v46 = vor.u32 %v2668_v33, %v1852_v35  ;;  %v2339_v51 = vor.u32 %v2793_v42, %v2338_v40  ;;  %v1954_v27 = vld [vmem:[#allocation2 + $0xd8] sm:$0xf]  ;;  %v2693_v32 = vld [vmem:[#allocation2 + $0xdc] sm:$0xf] }
  0x5e   :  { %v2697_v28 = vld [vmem:[#allocation2 + $0xf4] sm:$0xf0]  ;;  %v1956_v33 = vld [vmem:[#allocation2 + $0xf8] sm:$0xf0] }
  0x5f   :  { %974 = vmatpush.bf16.msra.mxu0 %v1979_v52  ;;  %1002 = vmatpush.bf16.msra.mxu2 %v1983_v54  ;;  %v2087_v52 = vor.u32 %v2725_v43, %v2084_v44  ;;  %v2721_v54 = vld [vmem:[#allocation2 + $0x1b4] sm:$0xf0]  ;;  %v2212_v35 = vld [vmem:[#allocation2 + $0x2f8] sm:$0xf0]  ;;  %v1955_v36 = vor.u32 %v2697_v28, %v1954_v27  ;;  %v1959_v38 = vor.u32 %v2693_v32, %v1956_v33  ;;  %v2856_v27 = vld [vmem:[#allocation4 + $0x1ec] sm:$0xf0] }
  0x60   :  { %v1922_v39 = vld [vmem:[#allocation2 + $0x98] sm:$0xf]  ;;  %v2685_v44 = vld [vmem:[#allocation2 + $0x9c] sm:$0xf]  ;;  %v2854_v28 = vld [vmem:[#allocation4 + $0x1e4] sm:$0xf] }
  0x61   :  { %988 = vmatpush.bf16.msra.mxu1 %v2235_v53  ;;  %1016 = vmatpush.bf16.msra.mxu3 %v2239_v59  ;;  %v2050_v53 = vld [vmem:[#allocation2 + $0x198] sm:$0xf]  ;;  %v2717_v59 = vld [vmem:[#allocation2 + $0x19c] sm:$0xf]  ;;  %v2816_v32 = vld [vmem:[#allocation4 + $0xac] sm:$0xf0] }
  0x62   :  { %v2051_v0 = vor.u32 %v2721_v54, %v2050_v53  ;;  %v2689_v40 = vld [vmem:[#allocation2 + $0xb4] sm:$0xf0]  ;;  %v2180_v47 = vld [vmem:[#allocation2 + $0x2b8] sm:$0xf0] }
  0x63   :  { %975 = vmatpush.bf16.msra.mxu0 %v1947_v2  ;;  %1003 = vmatpush.bf16.msra.mxu2 %v1951_v4  ;;  %v2055_v2 = vor.u32 %v2717_v59, %v2052_v60  ;;  %v2713_v4 = vld [vmem:[#allocation2 + $0x174] sm:$0xf0]  ;;  %v1923_v48 = vor.u32 %v2689_v40, %v1922_v39  ;;  %v1892_v58 = vld [vmem:[#allocation2 + $0x78] sm:$0xf0]  ;;  %v2852_v39 = vld [vmem:[#allocation4 + $0x1cc] sm:$0xf0] }
  0x64   :  { %v2753_v43 = vld [vmem:[#allocation2 + $0x2b4] sm:$0xf0]  ;;  %v2741_v59 = vld [vmem:[#allocation2 + $0x25c] sm:$0xf]  ;;  %v2850_v40 = vld [vmem:[#allocation4 + $0x1c4] sm:$0xf] }
  0x65   :  { %989 = vmatpush.bf16.msra.mxu1 %v2203_v3  ;;  %1017 = vmatpush.bf16.msra.mxu3 %v2207_v8  ;;  %v2018_v3 = vld [vmem:[#allocation2 + $0x158] sm:$0xf]  ;;  %v2709_v8 = vld [vmem:[#allocation2 + $0x15c] sm:$0xf] }
  0x66   :  { %v2019_v12 = vor.u32 %v2713_v4, %v2018_v3  ;;  %v2146_v53 = vld [vmem:[#allocation2 + $0x258] sm:$0xf]  ;;  %v2148_v60 = vld [vmem:[#allocation2 + $0x278] sm:$0xf0] }
  0x67   :  { %976 = vmatpush.bf16.msra.mxu0 %v1915_v14  ;;  %1004 = vmatpush.bf16.msra.mxu2 %v1919_v16  ;;  %v2023_v14 = vor.u32 %v2709_v8, %v2020_v9  ;;  %v2705_v16 = vld [vmem:[#allocation2 + $0x134] sm:$0xf0]  ;;  %v2151_v4 = vor.u32 %v2741_v59, %v2148_v60  ;;  %v1860_v7 = vld [vmem:[#allocation2 + $0x38] sm:$0xf0]  ;;  %v2556_v59 = vld [vmem:[#allocation4 + $0x1b0] sm:$0xf0] }
  0x68   :  { %v2745_v55 = vld [vmem:[#allocation2 + $0x274] sm:$0xf0]  ;;  %v2733_v8 = vld [vmem:[#allocation2 + $0x21c] sm:$0xf]  ;;  %v2394_v60 = vld [vmem:[#allocation4 + $0x60] sm:$0xf] }
  0x69   :  { %990 = vmatpush.bf16.msra.mxu1 %v2171_v15  ;;  %1018 = vmatpush.bf16.msra.mxu3 %v2175_v20  ;;  %v1986_v15 = vld [vmem:[#allocation2 + $0x118] sm:$0xf]  ;;  %v2701_v20 = vld [vmem:[#allocation2 + $0x11c] sm:$0xf]  ;;  %v2147_v62 = vor.u32 %v2745_v55, %v2146_v53  ;;  %v2848_v55 = vld [vmem:[#allocation4 + $0x1ac] sm:$0xf0] }
  0x6a   :  { %v1987_v24 = vor.u32 %v2705_v16, %v1986_v15  ;;  %v2114_v3 = vld [vmem:[#allocation2 + $0x218] sm:$0xf]  ;;  %v2116_v9 = vld [vmem:[#allocation2 + $0x238] sm:$0xf0]  ;;  %v2824_v15 = vld [vmem:[#allocation4 + $0xec] sm:$0xf0] }
  0x6b   :  { %977 = vmatpush.bf16.msra.mxu0 %v1883_v26  ;;  %1005 = vmatpush.bf16.msra.mxu2 %v1887_v30  ;;  %v1991_v26 = vor.u32 %v2701_v20, %v1988_v21  ;;  %v2247_v30 = vor.u32 %v2765_v22, %v2244_v23  ;;  %v2737_v5 = vld [vmem:[#allocation2 + $0x234] sm:$0xf0]  ;;  %v2822_v16 = vld [vmem:[#allocation4 + $0xe4] sm:$0xf]  ;;  %v2820_v20 = vld [vmem:[#allocation4 + $0xcc] sm:$0xf0] }
  0x6c   :  { %v2115_v11 = vor.u32 %v2737_v5, %v2114_v3  ;;  %v2818_v22 = vld [vmem:[#allocation4 + $0xc4] sm:$0xf]  ;;  %v2444_v23 = vld [vmem:[#allocation4 + $0xd0] sm:$0xf0]  ;;  %v2538_v3 = vld [vmem:[#allocation4 + $0x180] sm:$0xf] }
  0x6d   :  { %991 = vmatpush.bf16.msra.mxu1 %v2139_v29  ;;  %1019 = vmatpush.bf16.msra.mxu3 %v2143_v34  ;;  %v2210_v29 = vld [vmem:[#allocation2 + $0x2d8] sm:$0xf]  ;;  %v2757_v34 = vld [vmem:[#allocation2 + $0x2dc] sm:$0xf]  ;;  %v2844_v5 = vld [vmem:[#allocation4 + $0x18c] sm:$0xf0] }
  0x6e   :  { %v2211_v37 = vor.u32 %v2761_v31, %v2210_v29  ;;  %v2215_v42 = vor.u32 %v2757_v34, %v2212_v35  ;;  %v2426_v31 = vld [vmem:[#allocation4 + $0xa0] sm:$0xf]  ;;  %v2814_v35 = vld [vmem:[#allocation4 + $0xa4] sm:$0xf] }
  0x6f   :  { %978 = vmatpush.bf16.msra.mxu0 %v1851_v41  ;;  %1006 = vmatpush.bf16.msra.mxu2 %v1855_v46  ;;  %v2178_v41 = vld [vmem:[#allocation2 + $0x298] sm:$0xf]  ;;  %v2749_v46 = vld [vmem:[#allocation2 + $0x29c] sm:$0xf]  ;;  %v2427_v34 = vor.u32 %v2816_v32, %v2426_v31  ;;  %v2506_v32 = vld [vmem:[#allocation4 + $0x140] sm:$0xf] }
  0x70   :  { %v2183_v54 = vor.u32 %v2749_v46, %v2180_v47  ;;  %v2812_v46 = vld [vmem:[#allocation4 + $0x8c] sm:$0xf0]  ;;  %v2810_v47 = vld [vmem:[#allocation4 + $0x84] sm:$0xf] }
  0x71   :  { %992 = vmatpush.bf16.msra.mxu1 %v2107_v45  ;;  %1020 = vmatpush.bf16.msra.mxu3 %v2111_v49  ;;  %v1924_v45 = vld [vmem:[#allocation2 + $0xb8] sm:$0xf0]  ;;  %v2179_v49 = vor.u32 %v2753_v43, %v2178_v41  ;;  %v2572_v41 = vld [vmem:[#allocation4 + $0x1d0] sm:$0xf0] }
  0x72   :  { %1007 = vmatmul.bf16.vlgmr.msra.gmra.mxu2 %v3047_v56  ;;  %979 = vmatmul.bf16.vlgmr.msra.gmra.mxu0 %v3047_v56 }
  0x73   :  { %1027 = vmatpush.bf16.msrb.mxu0 %v2083_v50  ;;  %1055 = vmatpush.bf16.msrb.mxu2 %v2087_v52  ;;  %v1927_v50 = vor.u32 %v2685_v44, %v1924_v45  ;;  %v2681_v52 = vld [vmem:[#allocation2 + $0x74] sm:$0xf0]  ;;  %v2575_v44 = vor.u32 %v2850_v40, %v2572_v41  ;;  %v2410_v45 = vld [vmem:[#allocation4 + $0x80] sm:$0xf]  ;;  %v2796_v41 = vld [vmem:[#allocation4 + $0xc] sm:$0xf0] }
  0x74   :  { %1021 = vmatmul.bf16.vlgmr.msra.gmra.mxu3 %v3052_v63  ;;  %993 = vmatmul.bf16.vlgmr.msra.gmra.mxu1 %v3052_v63  ;;  %v2346_v40 = vld [vmem:[#allocation4] sm:$0xf] }
  0x75   :  { %1041 = vmatpush.bf16.msrb.mxu1 %v2339_v51  ;;  %1069 = vmatpush.bf16.msrb.mxu3 %v2343_v57  ;;  %v1890_v51 = vld [vmem:[#allocation2 + $0x58] sm:$0xf]  ;;  %v2677_v57 = vld [vmem:[#allocation2 + $0x5c] sm:$0xf] }
  0x76   :  { %v1891_v61 = vor.u32 %v2681_v52, %v1890_v51 }
  0x77   :  { %1028 = vmatpush.bf16.msrb.mxu0 %v2051_v0  ;;  %1056 = vmatpush.bf16.msrb.mxu2 %v2055_v2  ;;  %v1895_v0 = vor.u32 %v2677_v57, %v1892_v58  ;;  %v2673_v2 = vld [vmem:[#allocation2 + $0x34] sm:$0xf0]  ;;  %v2846_v57 = vld [vmem:[#allocation4 + $0x1a4] sm:$0xf] }
  0x79   :  { %1042 = vmatpush.bf16.msrb.mxu1 %v2307_v1  ;;  %1070 = vmatpush.bf16.msrb.mxu3 %v2311_v6  ;;  %v1858_v1 = vld [vmem:[#allocation2 + $0x18] sm:$0xf]  ;;  %v2669_v6 = vld [vmem:[#allocation2 + $0x1c] sm:$0xf] }
  0x7a   :  { %v1859_v10 = vor.u32 %v2673_v2, %v1858_v1  ;;  %v2806_v1 = vld [vmem:[#allocation4 + $0x64] sm:$0xf]  ;;  %v2396_v2 = vld [vmem:[#allocation4 + $0x70] sm:$0xf0] }
  0x7b   :  { %1029 = vmatpush.bf16.msrb.mxu0 %v2019_v12  ;;  %1057 = vmatpush.bf16.msrb.mxu2 %v2023_v14  ;;  %v1863_v12 = vor.u32 %v2669_v6, %v1860_v7  ;;  %v2458_v14 = vld [vmem:[#allocation4 + $0xe0] sm:$0xf]  ;;  %v2842_v6 = vld [vmem:[#allocation4 + $0x184] sm:$0xf]  ;;  %v2540_v7 = vld [vmem:[#allocation4 + $0x190] sm:$0xf0] }
  0x7c   :  { %v2459_v17 = vor.u32 %v2824_v15, %v2458_v14  ;;  %v2380_v14 = vld [vmem:[#allocation4 + $0x50] sm:$0xf0]  ;;  %v2522_v15 = vld [vmem:[#allocation4 + $0x160] sm:$0xf] }
  0x7d   :  { %1043 = vmatpush.bf16.msrb.mxu1 %v2275_v13  ;;  %1071 = vmatpush.bf16.msrb.mxu3 %v2279_v18  ;;  %v2119_v13 = vor.u32 %v2733_v8, %v2116_v9  ;;  %v2460_v18 = vld [vmem:[#allocation4 + $0xf0] sm:$0xf0]  ;;  %v2539_v8 = vor.u32 %v2844_v5, %v2538_v3  ;;  %v2543_v9 = vor.u32 %v2842_v6, %v2540_v7  ;;  %v2821_v3 = vld [vmem:[#allocation4 + $0xd4] sm:$0xf0]  ;;  %v2452_v6 = vld [vmem:[#allocation4 + $0xd8] sm:$0xf0] }
  0x7e   :  { %v2463_v21 = vor.u32 %v2822_v16, %v2460_v18  ;;  %v2840_v16 = vld [vmem:[#allocation4 + $0x16c] sm:$0xf0]  ;;  %v2474_v7 = vld [vmem:[#allocation4 + $0x100] sm:$0xf] }
  0x7f   :  { %1030 = vmatpush.bf16.msrb.mxu0 %v1987_v24  ;;  %1058 = vmatpush.bf16.msrb.mxu2 %v1991_v26  ;;  %v2443_v24 = vor.u32 %v2820_v20, %v2442_v19  ;;  %v2838_v19 = vld [vmem:[#allocation4 + $0x164] sm:$0xf]  ;;  %v2524_v20 = vld [vmem:[#allocation4 + $0x170] sm:$0xf0] }
  0x81   :  { %1044 = vmatpush.bf16.msrb.mxu1 %v2243_v25  ;;  %1072 = vmatpush.bf16.msrb.mxu3 %v2247_v30  ;;  %v2447_v25 = vor.u32 %v2818_v22, %v2444_v23  ;;  %v2588_v30 = vld [vmem:[#allocation4 + $0x1f0] sm:$0xf0]  ;;  %v2523_v22 = vor.u32 %v2840_v16, %v2522_v15  ;;  %v2527_v23 = vor.u32 %v2838_v19, %v2524_v20  ;;  %v2857_v15 = vld [vmem:[#allocation4 + $0x1f4] sm:$0xf0]  ;;  %v2855_v16 = vld [vmem:[#allocation4 + $0x1ec] sm:$0xf] }
  0x82   :  { %v2591_v33 = vor.u32 %v2854_v28, %v2588_v30  ;;  %v2798_v28 = vld [vmem:[#allocation4 + $0x24] sm:$0xf]  ;;  %v2364_v30 = vld [vmem:[#allocation4 + $0x30] sm:$0xf0] }
  0x83   :  { %1031 = vmatpush.bf16.msrb.mxu0 %v1955_v36  ;;  %1059 = vmatpush.bf16.msrb.mxu2 %v1959_v38  ;;  %v2428_v36 = vld [vmem:[#allocation4 + $0xb0] sm:$0xf0]  ;;  %v2367_v31 = vor.u32 %v2798_v28, %v2364_v30  ;;  %v2815_v30 = vld [vmem:[#allocation4 + $0xac] sm:$0xf] }
  0x84   :  { %v2431_v38 = vor.u32 %v2814_v35, %v2428_v36 }
  0x85   :  { %1045 = vmatpush.bf16.msrb.mxu1 %v2211_v37  ;;  %1073 = vmatpush.bf16.msrb.mxu3 %v2215_v42  ;;  %v2570_v37 = vld [vmem:[#allocation4 + $0x1c0] sm:$0xf] }
  0x86   :  { %v2571_v43 = vor.u32 %v2852_v39, %v2570_v37  ;;  %v2508_v37 = vld [vmem:[#allocation4 + $0x150] sm:$0xf0] }
  0x87   :  { %1032 = vmatpush.bf16.msrb.mxu0 %v1923_v48  ;;  %1060 = vmatpush.bf16.msrb.mxu2 %v1927_v50  ;;  %v2412_v50 = vld [vmem:[#allocation4 + $0x90] sm:$0xf0] }
  0x88   :  { %v2415_v51 = vor.u32 %v2810_v47, %v2412_v50  ;;  %v2825_v47 = vld [vmem:[#allocation4 + $0xf4] sm:$0xf0] }
  0x89   :  { %1046 = vmatpush.bf16.msrb.mxu1 %v2179_v49  ;;  %1074 = vmatpush.bf16.msrb.mxu3 %v2183_v54  ;;  %v2411_v49 = vor.u32 %v2812_v46, %v2410_v45  ;;  %v2554_v54 = vld [vmem:[#allocation4 + $0x1a0] sm:$0xf]  ;;  %v2348_v45 = vld [vmem:[#allocation4 + $0x10] sm:$0xf0]  ;;  %v2466_v46 = vld [vmem:[#allocation4 + $0xe8] sm:$0xf] }
  0x8a   :  { %v2555_v58 = vor.u32 %v2848_v55, %v2554_v54  ;;  %v2823_v54 = vld [vmem:[#allocation4 + $0xec] sm:$0xf]  ;;  %v2468_v55 = vld [vmem:[#allocation4 + $0xf8] sm:$0xf0] }
  0x8b   :  { %1033 = vmatpush.bf16.msrb.mxu0 %v1891_v61  ;;  %1061 = vmatpush.bf16.msrb.mxu2 %v1895_v0  ;;  %v2808_v61 = vld [vmem:[#allocation4 + $0x6c] sm:$0xf0] }
  0x8c   :  { %v2395_v0 = vor.u32 %v2808_v61, %v2394_v60  ;;  %v2832_v60 = vld [vmem:[#allocation4 + $0x12c] sm:$0xf0] }
  0x8d   :  { %1047 = vmatpush.bf16.msrb.mxu1 %v2147_v62  ;;  %1075 = vmatpush.bf16.msrb.mxu3 %v2151_v4  ;;  %v2559_v62 = vor.u32 %v2846_v57, %v2556_v59  ;;  %v2399_v4 = vor.u32 %v2806_v1, %v2396_v2  ;;  %v2490_v59 = vld [vmem:[#allocation4 + $0x120] sm:$0xf]  ;;  %v2450_v2 = vld [vmem:[#allocation4 + $0xc8] sm:$0xf] }
  0x8e   :  { %v2491_v61 = vor.u32 %v2832_v60, %v2490_v59  ;;  %v2451_v5 = vor.u32 %v2821_v3, %v2450_v2  ;;  %v2564_v59 = vld [vmem:[#allocation4 + $0x1b8] sm:$0xf0] }
  0x8f   :  { %1034 = vmatpush.bf16.msrb.mxu0 %v1859_v10  ;;  %1062 = vmatpush.bf16.msrb.mxu2 %v1863_v12  ;;  %v2378_v10 = vld [vmem:[#allocation4 + $0x40] sm:$0xf]  ;;  %v2802_v12 = vld [vmem:[#allocation4 + $0x44] sm:$0xf] }
  0x90   :  { %v2383_v18 = vor.u32 %v2802_v12, %v2380_v14  ;;  %v2476_v12 = vld [vmem:[#allocation4 + $0x110] sm:$0xf0] }
  0x91   :  { %1048 = vmatpush.bf16.msrb.mxu1 %v2115_v11  ;;  %1076 = vmatpush.bf16.msrb.mxu3 %v2119_v13  ;;  %v2804_v11 = vld [vmem:[#allocation4 + $0x4c] sm:$0xf0] }
  0x92   :  { %1035 = vmatmul.bf16.vlgmr.msrb.gmra.mxu0 %v3047_v56  ;;  %1063 = vmatmul.bf16.vlgmr.msrb.gmra.mxu2 %v3047_v56  ;;  %v2379_v13 = vor.u32 %v2804_v11, %v2378_v10  ;;  %v2826_v11 = vld [vmem:[#allocation4 + $0x104] sm:$0xf] }
  0x93   :  { %1495 = vmatpush.bf16.msra.mxu0 %v2459_v17  ;;  %1523 = vmatpush.bf16.msra.mxu2 %v2463_v21  ;;  %v2479_v14 = vor.u32 %v2826_v11, %v2476_v12  ;;  %v2548_v11 = vld [vmem:[#allocation4 + $0x198] sm:$0xf0] }
  0x94   :  { %1049 = vmatmul.bf16.vlgmr.msrb.gmra.mxu1 %v3052_v63  ;;  %1077 = vmatmul.bf16.vlgmr.msrb.gmra.mxu3 %v3052_v63  ;;  %v2586_v63 = vld [vmem:[#allocation4 + $0x1e0] sm:$0xf] }
  0x95   :  { %v2587_v29 = vor.u32 %v2856_v27, %v2586_v63  ;;  %1537 = vmatpush.bf16.msra.mxu3 %v2591_v33  ;;  %v2362_v63 = vld [vmem:[#allocation4 + $0x20] sm:$0xf]  ;;  %v2800_v27 = vld [vmem:[#allocation4 + $0x2c] sm:$0xf0] }
  0x96   :  { %v2836_v33 = vld [vmem:[#allocation4 + $0x14c] sm:$0xf0] }
  0x97   :  { %1496 = vmatpush.bf16.msra.mxu0 %v2443_v24  ;;  %1524 = vmatpush.bf16.msra.mxu2 %v2447_v25  ;;  %v2507_v36 = vor.u32 %v2836_v33, %v2506_v32 }
  0x98   :  { %1509 = vmatpush.bf16.msra.mxu1 %v2587_v29  ;;  %v2363_v29 = vor.u32 %v2800_v27, %v2362_v63  ;;  %v2817_v63 = vld [vmem:[#allocation4 + $0xb4] sm:$0xf0] }
  0x99   :  { %1538 = vmatpush.bf16.msra.mxu3 %v2575_v44  ;;  %v2347_v44 = vor.u32 %v2796_v41, %v2346_v40  ;;  %v2580_v40 = vld [vmem:[#allocation4 + $0x1d8] sm:$0xf0] }
  0x9b   :  { %1497 = vmatpush.bf16.msra.mxu0 %v2427_v34  ;;  %1525 = vmatpush.bf16.msra.mxu2 %v2431_v38  ;;  %v2834_v34 = vld [vmem:[#allocation4 + $0x144] sm:$0xf] }
  0x9c   :  { %1510 = vmatpush.bf16.msra.mxu1 %v2571_v43  ;;  %v2511_v39 = vor.u32 %v2834_v34, %v2508_v37  ;;  %v2794_v43 = vld [vmem:[#allocation4 + $0x4] sm:$0xf]  ;;  %v2578_v34 = vld [vmem:[#allocation4 + $0x1c8] sm:$0xf]  ;;  %v2851_v37 = vld [vmem:[#allocation4 + $0x1cc] sm:$0xf] }
  0x9d   :  { %1539 = vmatpush.bf16.msra.mxu3 %v2559_v62  ;;  %v2351_v50 = vor.u32 %v2794_v43, %v2348_v45  ;;  %v2830_v62 = vld [vmem:[#allocation4 + $0x124] sm:$0xf]  ;;  %v2583_v41 = vor.u32 %v2851_v37, %v2580_v40  ;;  %v2418_v43 = vld [vmem:[#allocation4 + $0x88] sm:$0xf]  ;;  %v2811_v45 = vld [vmem:[#allocation4 + $0x8c] sm:$0xf] }
  0x9e   :  { %v2799_v37 = vld [vmem:[#allocation4 + $0x2c] sm:$0xf]  ;;  %v2372_v40 = vld [vmem:[#allocation4 + $0x38] sm:$0xf0] }
  0x9f   :  { %1498 = vmatpush.bf16.msra.mxu0 %v2411_v49  ;;  %1526 = vmatpush.bf16.msra.mxu2 %v2415_v51  ;;  %v2467_v51 = vor.u32 %v2825_v47, %v2466_v46  ;;  %v2420_v47 = vld [vmem:[#allocation4 + $0x98] sm:$0xf0] }
  0xa0   :  { %1511 = vmatpush.bf16.msra.mxu1 %v2555_v58  ;;  %v2471_v58 = vor.u32 %v2823_v54, %v2468_v55  ;;  %v2849_v54 = vld [vmem:[#allocation4 + $0x1b4] sm:$0xf0]  ;;  %v2847_v55 = vld [vmem:[#allocation4 + $0x1ac] sm:$0xf] }
  0xa1   :  { %1540 = vmatpush.bf16.msra.mxu3 %v2543_v9 }
  0xa3   :  { %1499 = vmatpush.bf16.msra.mxu0 %v2395_v0  ;;  %1527 = vmatpush.bf16.msra.mxu2 %v2399_v4  ;;  %v2492_v0 = vld [vmem:[#allocation4 + $0x130] sm:$0xf0]  ;;  %v2819_v4 = vld [vmem:[#allocation4 + $0xcc] sm:$0xf] }
  0xa4   :  { %1512 = vmatpush.bf16.msra.mxu1 %v2539_v8  ;;  %v2495_v1 = vor.u32 %v2830_v62, %v2492_v0  ;;  %v2828_v8 = vld [vmem:[#allocation4 + $0x10c] sm:$0xf0]  ;;  %v2455_v9 = vor.u32 %v2819_v4, %v2452_v6  ;;  %v2402_v62 = vld [vmem:[#allocation4 + $0x68] sm:$0xf]  ;;  %v2809_v0 = vld [vmem:[#allocation4 + $0x74] sm:$0xf0] }
  0xa5   :  { %1541 = vmatpush.bf16.msra.mxu3 %v2527_v23  ;;  %v2475_v10 = vor.u32 %v2828_v8, %v2474_v7  ;;  %v2434_v23 = vld [vmem:[#allocation4 + $0xa8] sm:$0xf]  ;;  %v2403_v3 = vor.u32 %v2809_v0, %v2402_v62  ;;  %v2404_v4 = vld [vmem:[#allocation4 + $0x78] sm:$0xf0]  ;;  %v2845_v7 = vld [vmem:[#allocation4 + $0x194] sm:$0xf0] }
  0xa6   :  { %v2546_v6 = vld [vmem:[#allocation4 + $0x188] sm:$0xf]  ;;  %v2843_v8 = vld [vmem:[#allocation4 + $0x18c] sm:$0xf]  ;;  %v2356_v62 = vld [vmem:[#allocation4 + $0x18] sm:$0xf0] }
  0xa7   :  { %1500 = vmatpush.bf16.msra.mxu0 %v2379_v13  ;;  %1528 = vmatpush.bf16.msra.mxu2 %v2383_v18  ;;  %v2594_v13 = vld [vmem:[#allocation4 + $0x1e8] sm:$0xf]  ;;  %v2596_v18 = vld [vmem:[#allocation4 + $0x1f8] sm:$0xf0] }
  0xa8   :  { %1513 = vmatpush.bf16.msra.mxu1 %v2523_v22  ;;  %v2595_v20 = vor.u32 %v2857_v15, %v2594_v13  ;;  %v2599_v22 = vor.u32 %v2855_v16, %v2596_v18  ;;  %v2551_v13 = vor.u32 %v2843_v8, %v2548_v11  ;;  %v2805_v15 = vld [vmem:[#allocation4 + $0x54] sm:$0xf0]  ;;  %v2803_v16 = vld [vmem:[#allocation4 + $0x4c] sm:$0xf]  ;;  %v2500_v8 = vld [vmem:[#allocation4 + $0x138] sm:$0xf0] }
  0xa9   :  { %1542 = vmatpush.bf16.msra.mxu3 %v2511_v39 }
  0xab   :  { %1501 = vmatpush.bf16.msra.mxu0 %v2363_v29  ;;  %1529 = vmatpush.bf16.msra.mxu2 %v2367_v31  ;;  %v2435_v29 = vor.u32 %v2817_v63, %v2434_v23  ;;  %v2436_v31 = vld [vmem:[#allocation4 + $0xb8] sm:$0xf0]  ;;  %v2530_v23 = vld [vmem:[#allocation4 + $0x168] sm:$0xf]  ;;  %v2841_v63 = vld [vmem:[#allocation4 + $0x174] sm:$0xf0] }
  0xac   :  { %1514 = vmatpush.bf16.msra.mxu1 %v2507_v36  ;;  %v2439_v33 = vor.u32 %v2815_v30, %v2436_v31  ;;  %v2853_v36 = vld [vmem:[#allocation4 + $0x1d4] sm:$0xf0]  ;;  %v2531_v30 = vor.u32 %v2841_v63, %v2530_v23  ;;  %v2532_v31 = vld [vmem:[#allocation4 + $0x178] sm:$0xf0] }
  0xad   :  { %1543 = vmatpush.bf16.msra.mxu3 %v2495_v1  ;;  %v2579_v39 = vor.u32 %v2853_v36, %v2578_v34  ;;  %v2807_v1 = vld [vmem:[#allocation4 + $0x6c] sm:$0xf]  ;;  %v2370_v34 = vld [vmem:[#allocation4 + $0x28] sm:$0xf]  ;;  %v2801_v36 = vld [vmem:[#allocation4 + $0x34] sm:$0xf0] }
  0xae   :  { %v2484_v63 = vld [vmem:[#allocation4 + $0x118] sm:$0xf0] }
  0xaf   :  { %v3070_v26 = vpop.f32.mrf.mxu0  ;;  %1502 = vmatpush.bf16.msra.mxu0 %v2347_v44  ;;  %1530 = vmatpush.bf16.msra.mxu2 %v2351_v50  ;;  %v2813_v44 = vld [vmem:[#allocation4 + $0x94] sm:$0xf0]  ;;  %v2423_v50 = vor.u32 %v2811_v45, %v2420_v47  ;;  %v2375_v45 = vor.u32 %v2799_v37, %v2372_v40  ;;  %v2835_v47 = vld [vmem:[#allocation4 + $0x14c] sm:$0xf] }
  0xb0   :  { %1515 = vmatpush.bf16.msra.mxu1 %v2491_v61  ;;  %v2419_v46 = vor.u32 %v2813_v44, %v2418_v43  ;;  %v2567_v61 = vor.u32 %v2847_v55, %v2564_v59  ;;  %v2837_v43 = vld [vmem:[#allocation4 + $0x154] sm:$0xf0] }
  0xb1   :  { %v3072_v56 = vpop.f32.mrf.mxu1  ;;  %1544 = vmatpush.bf16.msra.mxu3 %v2479_v14  ;;  %v2386_v14 = vld [vmem:[#allocation4 + $0x48] sm:$0xf]  ;;  %v2797_v59 = vld [vmem:[#allocation4 + $0x14] sm:$0xf0] }
  0xb2   :  { %v2387_v18 = vor.u32 %v2805_v15, %v2386_v14 }
  0xb3   :  { %1551 = vmatpush.bf16.msrb.mxu0 %v2467_v51  ;;  %1579 = vmatpush.bf16.msrb.mxu2 %v2471_v58  ;;  %v2562_v51 = vld [vmem:[#allocation4 + $0x1a8] sm:$0xf] }
  0xb4   :  { %1516 = vmatpush.bf16.msra.mxu1 %v2475_v10  ;;  %v2563_v58 = vor.u32 %v2849_v54, %v2562_v51  ;;  %v2547_v10 = vor.u32 %v2845_v7, %v2546_v6  ;;  %v2354_v51 = vld [vmem:[#allocation4 + $0x8] sm:$0xf]  ;;  %v2831_v6 = vld [vmem:[#allocation4 + $0x12c] sm:$0xf] }
  0xb5   :  { %v3074_v42 = vpop.f32.mrf.mxu2  ;;  %1593 = vmatpush.bf16.msrb.mxu3 %v2599_v22  ;;  %v2503_v15 = vor.u32 %v2831_v6, %v2500_v8  ;;  %v2859_v8 = vld [vmem:[%s3193_s5 + $0x8] sm:$0xff] }
  0xb7   :  { %v3076_v48 = vpop.f32.mrf.mxu3  ;;  %v3078_v52 = vpop.f32.mrf.mxu0  ;;  %1552 = vmatpush.bf16.msrb.mxu0 %v2451_v5  ;;  %1580 = vmatpush.bf16.msrb.mxu2 %v2455_v9  ;;  %v2407_v5 = vor.u32 %v2807_v1, %v2404_v4  ;;  %v2355_v1 = vor.u32 %v2797_v59, %v2354_v51  ;;  %v2498_v4 = vld [vmem:[#allocation4 + $0x128] sm:$0xf] }
  0xb8   :  { %1565 = vmatpush.bf16.msrb.mxu1 %v2595_v20  ;;  %v2388_v20 = vld [vmem:[#allocation4 + $0x58] sm:$0xf0] }
  0xb9   :  { %v3080_v53 = vpop.f32.mrf.mxu1  ;;  %1594 = vmatpush.bf16.msrb.mxu3 %v2583_v41  ;;  %v2391_v22 = vor.u32 %v2803_v16, %v2388_v20  ;;  %v2514_v41 = vld [vmem:[#allocation4 + $0x148] sm:$0xf]  ;;  %v2829_v20 = vld [vmem:[#allocation4 + $0x114] sm:$0xf0] }
  0xbb   :  { %1553 = vmatpush.bf16.msrb.mxu0 %v2435_v29  ;;  %1581 = vmatpush.bf16.msrb.mxu2 %v2439_v33  ;;  %v2839_v29 = vld [vmem:[#allocation4 + $0x16c] sm:$0xf] }
  0xbc   :  { %1566 = vmatpush.bf16.msrb.mxu1 %v2579_v39  ;;  %v2535_v33 = vor.u32 %v2839_v29, %v2532_v31  ;;  %v2371_v39 = vor.u32 %v2801_v36, %v2370_v34 }
  0xbd   :  { %v3082_v17 = vpop.f32.mrf.mxu2  ;;  %1595 = vmatpush.bf16.msrb.mxu3 %v2567_v61  ;;  %v2795_v61 = vld [vmem:[#allocation4 + $0xc] sm:$0xf] }
  0xbf   :  { %v3084_v21 = vpop.f32.mrf.mxu3  ;;  %1554 = vmatpush.bf16.msrb.mxu0 %v2419_v46  ;;  %1582 = vmatpush.bf16.msrb.mxu2 %v2423_v50  ;;  %v2515_v46 = vor.u32 %v2837_v43, %v2514_v41  ;;  %v2516_v50 = vld [vmem:[#allocation4 + $0x158] sm:$0xf0] }
  0xc0   :  { %1567 = vmatpush.bf16.msrb.mxu1 %v2563_v58  ;;  %v2519_v58 = vor.u32 %v2835_v47, %v2516_v50 }
  0xc1   :  { %1596 = vmatpush.bf16.msrb.mxu3 %v2551_v13 }
  0xc3   :  { %1555 = vmatpush.bf16.msrb.mxu0 %v2403_v3  ;;  %1583 = vmatpush.bf16.msrb.mxu2 %v2407_v5  ;;  %v2359_v3 = vor.u32 %v2795_v61, %v2356_v62  ;;  %v2833_v5 = vld [vmem:[#allocation4 + $0x134] sm:$0xf0] }
  0xc4   :  { %1568 = vmatpush.bf16.msrb.mxu1 %v2547_v10  ;;  %v883_v10 = vadd.f32 %v3072_v56, %v3070_v26  ;;  %v2499_v11 = vor.u32 %v2833_v5, %v2498_v4  ;;  %v1095_v26 = vld [vmem:[%s3190_s2] sm:$0x3]  ;;  %v2860_v4 = vld [vmem:[%s3193_s5 + $0x10] sm:$0xff] }
  0xc5   :  { %1597 = vmatpush.bf16.msrb.mxu3 %v2535_v33  ;;  %v1097_v37 = vperm.slane %v1095_v26, 0  ;;  %v1098_v50 = vperm.slane %v1095_v26, 1 }
  0xc7   :  { %1556 = vmatpush.bf16.msrb.mxu0 %v2387_v18  ;;  %1584 = vmatpush.bf16.msrb.mxu2 %v2391_v22  ;;  %v2482_v18 = vld [vmem:[#allocation4 + $0x108] sm:$0xf]  ;;  %v2827_v22 = vld [vmem:[#allocation4 + $0x10c] sm:$0xf] }
  0xc8   :  { %1569 = vmatpush.bf16.msrb.mxu1 %v2531_v30  ;;  %v2483_v23 = vor.u32 %v2829_v20, %v2482_v18  ;;  %v2487_v29 = vor.u32 %v2827_v22, %v2484_v63  ;;  %v885_v30 = vadd.f32 %v3080_v53, %v3078_v52  ;;  %v911_v52 = vadd.f32 %v3076_v48, %v3074_v42  ;;  %v2872_v18 = vld [vmem:[#allocation6 + $0x30] sm:$0xff]  ;;  %v2871_v22 = vld [vmem:[#allocation6 + $0x28] sm:$0xff]  ;;  %v2870_v63 = vld [vmem:[#allocation6 + $0x20] sm:$0xff] }
  0xc9   :  { %1598 = vmatpush.bf16.msrb.mxu3 %v2519_v58 }
  0xcb   :  { %1557 = vmatpush.bf16.msrb.mxu0 %v2371_v39  ;;  %1585 = vmatpush.bf16.msrb.mxu2 %v2375_v45 }
  0xcc   :  { %1570 = vmatpush.bf16.msrb.mxu1 %v2515_v46 }
  0xcd   :  { %1599 = vmatpush.bf16.msrb.mxu3 %v2503_v15 }
  0xcf   :  { %v3086_v24 = vpop.f32.mrf.mxu0  ;;  %1558 = vmatpush.bf16.msrb.mxu0 %v2355_v1  ;;  %1586 = vmatpush.bf16.msrb.mxu2 %v2359_v3  ;;  %v2862_v1 = vld [vmem:[%s3193_s5 + $0x20] sm:$0xff]  ;;  %v2861_v3 = vld [vmem:[%s3193_s5 + $0x18] sm:$0xff] }
  0xd0   :  { %1571 = vmatpush.bf16.msrb.mxu1 %v2499_v11  ;;  %v2858_v11 = vld [vmem:[%s3193_s5] sm:$0xff] }
  0xd1   :  { %v3088_v25 = vpop.f32.mrf.mxu1  ;;  %1600 = vmatpush.bf16.msrb.mxu3 %v2487_v29 }
  0xd2   :  { %v939_v13 = vadd.f32 %v3088_v25, %v3086_v24 }
  0xd4   :  { %v1083_v24 = vmax.f32 %v883_v10, %v939_v13  ;;  %1572 = vmatpush.bf16.msrb.mxu1 %v2483_v23 }
  0xd5   :  { %v3090_v35 = vpop.f32.mrf.mxu2 }
  0xd7   :  { %v3092_v38 = vpop.f32.mrf.mxu3  ;;  %v3094_v49 = vpop.f32.mrf.mxu0 }
  0xd8   :  { %v967_v40 = vadd.f32 %v3092_v38, %v3090_v35  ;;  %v913_v35 = vadd.f32 %v3084_v21, %v3082_v17 }
  0xd9   :  { %v3096_v57 = vpop.f32.mrf.mxu1 }
  0xda   :  { %v941_v25 = vadd.f32 %v3096_v57, %v3094_v49 }
  0xdc   :  { %v1085_v57 = vmax.f32 %v885_v30, %v941_v25 }
  0xdd   :  { %v3098_v19 = vpop.f32.mrf.mxu2 }
  0xdf   :  { %v3100_v27 = vpop.f32.mrf.mxu3 }
  0xef   :  { %v3102_v28 = vpop.f32.mrf.mxu0 }
  0xf1   :  { %v3104_v32 = vpop.f32.mrf.mxu1 }
  0xf2   :  { %v995_v14 = vadd.f32 %v3104_v32, %v3102_v28 }
  0xf5   :  { %v3106_v60 = vpop.f32.mrf.mxu2 }
  0xf7   :  { %v3108_v2 = vpop.f32.mrf.mxu3  ;;  %v3110_v9 = vpop.f32.mrf.mxu0 }
  0xf8   :  { %v1023_v49 = vadd.f32 %v3108_v2, %v3106_v60 }
  0xf9   :  { %v3112_v12 = vpop.f32.mrf.mxu1 }
  0xfa   :  { %v997_v34 = vadd.f32 %v3112_v12, %v3110_v9  ;;  %v1084_v9 = vmax.f32 %v911_v52, %v967_v40  ;;  %v969_v12 = vadd.f32 %v3100_v27, %v3098_v19 }
  0xfd   :  { %v3114_v44 = vpop.f32.mrf.mxu2 }
  0xff   :  { %v3116_v54 = vpop.f32.mrf.mxu3 }
 0x100   :  { %v1025_v2 = vadd.f32 %v3116_v54, %v3114_v44  ;;  %v2865_v44 = vld [vmem:[%s3193_s5 + $0x38] sm:$0xff]  ;;  %v2864_v54 = vld [vmem:[%s3193_s5 + $0x30] sm:$0xff] }
 0x10f   :  { %v1036_v55 = vpop.f32.mrf.mxu0 }
 0x111   :  { %v1050_v0 = vpop.f32.mrf.mxu1 }
 0x112   :  { %v1051_v7 = vadd.f32 %v1050_v0, %v1036_v55  ;;  %v1086_v55 = vmax.f32 %v913_v35, %v969_v12  ;;  %v2863_v0 = vld [vmem:[%s3193_s5 + $0x28] sm:$0xff] }
 0x114   :  { %v1087_v16 = vmax.f32 %v995_v14, %v1051_v7 }
 0x115   :  { %v1064_v56 = vpop.f32.mrf.mxu2 }
 0x116   :  { %v1091_v36 = vmax.f32 %v1083_v24, %v1087_v16  ;;  %v2873_v16 = vld [vmem:[#allocation6 + $0x38] sm:$0xff] }
 0x117   :  { %v1078_v28 = vpop.f32.mrf.mxu3  ;;  %v1038_v32 = vpop.f32.mrf.mxu0 }
 0x118   :  { %v1079_v31 = vadd.f32 %v1078_v28, %v1064_v56  ;;  %v1101_v43 = vadd.f32 %v1097_v37, %v1091_v36 }
 0x119   :  { %v1052_v33 = vpop.f32.mrf.mxu1 }
 0x11a   :  { %v1053_v39 = vadd.f32 %v1052_v33, %v1038_v32  ;;  %v1088_v53 = vmax.f32 %v1023_v49, %v1079_v31  ;;  %v1105_v42 = vmax.f32 %v1101_v43, 0.0 }
 0x11c   :  { %v1089_v41 = vmax.f32 %v997_v34, %v1053_v39  ;;  %v1092_v47 = vmax.f32 %v1084_v9, %v1088_v53 }
 0x11d   :  { %v1066_v46 = vpop.f32.mrf.mxu2 }
 0x11e   :  { %v1093_v45 = vmax.f32 %v1085_v57, %v1089_v41  ;;  %v1102_v61 = vadd.f32 %v1098_v50, %v1092_v47  ;;  %v2883_v57 = vld [vmem:[%s3192_s4] ss:$0 sm:$0xff]  ;;  %v2867_v47 = vld [vmem:[#allocation6 + $0x8] sm:$0xff] }
 0x11f   :  { %v1080_v60 = vpop.f32.mrf.mxu3 }
 0x120   :  { %v1103_v38 = vadd.f32 %v1097_v37, %v1093_v45  ;;  %v1081_v51 = vadd.f32 %v1080_v60, %v1066_v46  ;;  %v1106_v27 = vmax.f32 %v1102_v61, 0.0  ;;  %v2869_v60 = vld [vmem:[#allocation6 + $0x18] sm:$0xff] }
 0x122   :  { %v1107_v48 = vmax.f32 %v1103_v38, 0.0  ;;  %v1090_v58 = vmax.f32 %v1025_v2, %v1081_v51  ;;  %v2868_v2 = vld [vmem:[#allocation6 + $0x10] sm:$0xff] }
 0x124   :  { %v1109_v59 = vpack.c.bf16 %v1107_v48, %v1105_v42  ;;  %v1094_v62 = vmax.f32 %v1086_v55, %v1090_v58  ;;  %v2884_v42 = vld [vmem:[%s3194_s6] ss:$0 sm:$0xff] }
 0x126   :  { %1503 = vmatmul.bf16.vlgmr.msra.gmra.mxu0 %v1109_v59  ;;  %1531 = vmatmul.bf16.vlgmr.msra.gmra.mxu2 %v1109_v59  ;;  %v1104_v19 = vadd.f32 %v1098_v50, %v1094_v62  ;;  %v2866_v50 = vld [vmem:[#allocation6] sm:$0xff] }
 0x127   :  { %1690 = vmatpush.bf16.msra.mxu0 %v2865_v44 }
 0x128   :  { %v1108_v17 = vmax.f32 %v1104_v19, 0.0  ;;  %v1789_v19 = vlaneseq }
 0x12a   :  { %v1110_v21 = vpack.c.bf16 %v1108_v17, %v1106_v27  ;;  %v1790_v27 = vand.u32 127, %v1789_v19  ;;  %v2885_v17 = vld [vmem:[%s3196_s8] ss:$0 sm:$0xff] }
 0x12b   :  { %1691 = vmatpush.bf16.msra.mxu0 %v2864_v54 }
 0x12c   :  { %1517 = vmatmul.bf16.vlgmr.msra.gmra.mxu1 %v1110_v21  ;;  %1545 = vmatmul.bf16.vlgmr.msra.gmra.mxu3 %v1110_v21  ;;  %vm1791_vm0 = vcmp.lt.s32.totalorder %v1790_v27, 10 }
 0x12d   :  { %1775 = vmatpush.bf16.msra.mxu1 %v2873_v16 }
 0x12f   :  { %1692 = vmatpush.bf16.msra.mxu0 %v2863_v0 }
 0x131   :  { %1776 = vmatpush.bf16.msra.mxu1 %v2872_v18 }
 0x133   :  { %1693 = vmatpush.bf16.msra.mxu0 %v2862_v1 }
 0x135   :  { %1777 = vmatpush.bf16.msra.mxu1 %v2871_v22 }
 0x136   :  { %1559 = vmatmul.bf16.vlgmr.msrb.gmra.mxu0 %v1109_v59  ;;  %1587 = vmatmul.bf16.vlgmr.msrb.gmra.mxu2 %v1109_v59 }
 0x137   :  { %1694 = vmatpush.bf16.msra.mxu0 %v2861_v3 }
 0x139   :  { %1778 = vmatpush.bf16.msra.mxu1 %v2870_v63 }
 0x13b   :  { %1695 = vmatpush.bf16.msra.mxu0 %v2860_v4 }
 0x13c   :  { %1573 = vmatmul.bf16.vlgmr.msrb.gmra.mxu1 %v1110_v21  ;;  %1601 = vmatmul.bf16.vlgmr.msrb.gmra.mxu3 %v1110_v21 }
 0x13d   :  { %1779 = vmatpush.bf16.msra.mxu1 %v2869_v60 }
 0x13f   :  { %1696 = vmatpush.bf16.msra.mxu0 %v2859_v8 }
 0x141   :  { %1780 = vmatpush.bf16.msra.mxu1 %v2868_v2 }
 0x143   :  { %1697 = vmatpush.bf16.msra.mxu0 %v2858_v11 }
 0x145   :  { %1781 = vmatpush.bf16.msra.mxu1 %v2867_v47 }
 0x149   :  { %1782 = vmatpush.bf16.msra.mxu1 %v2866_v50 }
 0x1a3   :  { %v1504_v5 = vpop.f32.mrf.mxu0 }
 0x1a9   :  { %v1518_v6 = vpop.f32.mrf.mxu1  ;;  %v1532_v7 = vpop.f32.mrf.mxu2 }
 0x1aa   :  { %v1519_v29 = vadd.f32 %v1518_v6, %v1504_v5 }
 0x1ab   :  { %v1506_v14 = vpop.f32.mrf.mxu0 }
 0x1af   :  { %v1546_v10 = vpop.f32.mrf.mxu3 }
 0x1b0   :  { %v1547_v28 = vadd.f32 %v1546_v10, %v1532_v7 }
 0x1b1   :  { %v1520_v13 = vpop.f32.mrf.mxu1  ;;  %v1534_v15 = vpop.f32.mrf.mxu2 }
 0x1b2   :  { %v1607_v33 = vmax.f32 %v1519_v29, %v1547_v28  ;;  %v1521_v40 = vadd.f32 %v1520_v13, %v1506_v14 }
 0x1b3   :  { %v1560_v56 = vpop.f32.mrf.mxu0 }
 0x1b7   :  { %v1548_v20 = vpop.f32.mrf.mxu3 }
 0x1b8   :  { %v1549_v34 = vadd.f32 %v1548_v20, %v1534_v15 }
 0x1b9   :  { %v1574_v26 = vpop.f32.mrf.mxu1  ;;  %v1588_v23 = vpop.f32.mrf.mxu2 }
 0x1ba   :  { %v1575_v32 = vadd.f32 %v1574_v26, %v1560_v56  ;;  %v1608_v53 = vmax.f32 %v1521_v40, %v1549_v34 }
 0x1bb   :  { %v1562_v36 = vpop.f32.mrf.mxu0 }
 0x1bf   :  { %v1602_v24 = vpop.f32.mrf.mxu3 }
 0x1c0   :  { %v1603_v25 = vadd.f32 %v1602_v24, %v1588_v23 }
 0x1c1   :  { %v1576_v31 = vpop.f32.mrf.mxu1  ;;  %v1590_v37 = vpop.f32.mrf.mxu2 }
 0x1c2   :  { %v1609_v30 = vmax.f32 %v1575_v32, %v1603_v25  ;;  %v1577_v41 = vadd.f32 %v1576_v31, %v1562_v36 }
 0x1c4   :  { %v1611_v49 = vmax.f32 %v1607_v33, %v1609_v30 }
 0x1c6   :  { %v1617_v45 = vadd.f32 %v2883_v57, %v1611_v49 }
 0x1c7   :  { %v1604_v39 = vpop.f32.mrf.mxu3 }
 0x1c8   :  { %v1605_v52 = vadd.f32 %v1604_v39, %v1590_v37  ;;  %v1619_v46 = vmax.f32 %v1617_v45, 0.0 }
 0x1ca   :  { %v1610_v43 = vmax.f32 %v1577_v41, %v1605_v52 }
 0x1cc   :  { %v1612_v9 = vmax.f32 %v1608_v53, %v1610_v43 }
 0x1ce   :  { %v1618_v12 = vadd.f32 %v2883_v57, %v1612_v9 }
 0x1d0   :  { %v1620_v35 = vmax.f32 %v1618_v12, 0.0 }
 0x1d2   :  { %v1621_v38 = vpack.c.bf16 %v1620_v35, %v1619_v46 }
 0x1d4   :  { %1698 = vmatmul.bf16.vlgmr.msra.gmra.mxu0 %v1621_v38 }
 0x251   :  { %v1699_v51 = vpop.f32.mrf.mxu0 }
 0x252   :  { %v1700_v48 = vadd.f32 %v2884_v42, %v1699_v51 }
 0x254   :  { %v1704_v59 = vmax.f32 %v1700_v48, 0.0 }
 0x259   :  { %v1701_v55 = vpop.f32.mrf.mxu0 }
 0x25a   :  { %v1702_v58 = vadd.f32 %v2884_v42, %v1701_v55 }
 0x25c   :  { %v1705_v61 = vmax.f32 %v1702_v58, 0.0 }
 0x25e   :  { %v1706_v62 = vpack.c.bf16 %v1705_v61, %v1704_v59 }
 0x260   :  { %1783 = vmatmul.bf16.vlgmr.msra.gmra.mxu1 %v1706_v62 }
 0x2dd   :  { %v1784_v21 = vpop.f32.mrf.mxu1 }
 0x2de   :  { %v1785_v44 = vadd.f32 %v2885_v17, %v1784_v21 }
 0x2e0   :  { %v1792_v54 = vsel %vm1791_vm0, %v1785_v44, -1e+30 }
 0x2e1   :  { %1794 = vmax.xlane.f32.xlu0 %v1792_v54 }
 0x2e5   :  { %v1786_v0 = vpop.f32.mrf.mxu1 }
 0x2e6   :  { %v1787_v1 = vadd.f32 %v2885_v17, %v1786_v0 }
 0x2e8   :  { %v1793_v3 = vsel %vm1791_vm0, %v1787_v1, -1e+30 }
 0x2e9   :  { %1796 = vmax.xlane.f32.xlu0 %v1793_v3 }
 0x354   :  { %v1795_v4 = vpop.xlane.xlu0 %1794 }
 0x355   :  { %v1798_v5 = vsub.f32 %v1792_v54, %v1795_v4 }
 0x357   :  { %v1800_v6 = vmul.f32 1.442695, %v1798_v5 }
 0x359   :  { %2886 = vpow2.f32 %v1800_v6 }
 0x35c   :  { %v1797_v7 = vpop.xlane.xlu0 %1796 }
 0x35d   :  { %v1799_v8 = vsub.f32 %v1793_v3, %v1797_v7 }
 0x35f   :  { %v2887_v10 = vpop.eup %2886  ;;  %v1802_v11 = vmul.f32 1.442695, %v1799_v8 }
 0x360   :  { %v1804_v13 = vsel %vm1791_vm0, %v2887_v10, 0.0 }
 0x361   :  { %2888 = vpow2.f32 %v1802_v11  ;;  %1806 = vadd.xlane.f32.xlu1 %v1804_v13 }
 0x367   :  { %v2889_v14 = vpop.eup %2888 }
 0x368   :  { %v1805_v15 = vsel %vm1791_vm0, %v2889_v14, 0.0 }
 0x369   :  { %1808 = vadd.xlane.f32.xlu1 %v1805_v15 }
 0x3d4   :  { %v1807_v16 = vpop.xlane.xlu1 %1806 }
 0x3d5   :  { %2890 = vlog2.f32 %v1807_v16 }
 0x3db   :  { %v2891_v18 = vpop.eup %2890 }
 0x3dc   :  { %v1811_v20 = vmul.f32 0.6931472, %v2891_v18  ;;  %v1809_v22 = vpop.xlane.xlu1 %1808 }
 0x3dd   :  { %2892 = vlog2.f32 %v1809_v22 }
 0x3de   :  { %v1814_v26 = vsub.f32 %v1798_v5, %v1811_v20 }
 0x3e0   :  { %1816 = vst [vmem:[%s3197_s9] sm:$0xff] %v1814_v26 }
 0x3e3   :  { %v2893_v56 = vpop.eup %2892 }
 0x3e4   :  { %v1813_v23 = vmul.f32 0.6931472, %v2893_v56 }
 0x3e6   :  { %v1815_v63 = vsub.f32 %v1799_v8, %v1813_v23 }
 0x3e8   :  { %1817 = vst [vmem:[%s3197_s9 + $0x8] sm:$0xff] %v1815_v63 }
 0x3e9   :  { %1822 = vsyncpa [#allocation3], 1 }
 0x3ea   :  { %1823 = vsyncpa [#allocation5], 1 }

</bundles_post_ra>
